<compile_context>
chip_gen: v6e
topology: v6e:2x2x1
jax: 0.10.0
libtpu: 0.0.40
codegen_flags: <defaults>
</compile_context>

<pallas_src>
import functools

import jax
import jax.numpy as jnp
from jax.experimental import pallas as pl
from jax.experimental.pallas import tpu as pltpu


# ----------------------------------------------------------------------------
# Wrapper-side padding / packing helpers (layout plumbing only)
# ----------------------------------------------------------------------------
def _round_up(x, m):
    return (x + m - 1) // m * m


def _pad_axis(x, axis, target):
    pad = target - x.shape[axis]
    if pad == 0:
        return x
    widths = [(0, 0)] * x.ndim
    widths[axis] = (0, pad)
    return jnp.pad(x, widths)


def _pack_gates(w, h, hp):
    """(..., 4*h) LSTM weight/bias in PyTorch gate order [i,f,g,o] ->
    (..., 4*hp) in kernel order [i,f,o,g], each gate zero-padded to hp lanes."""
    lead = w.shape[:-1]
    w4 = w.reshape(*lead, 4, h)
    w4 = jnp.take(w4, jnp.array([0, 1, 3, 2]), axis=-2)   # i, f, o, g
    w4 = _pad_axis(w4, w4.ndim - 1, hp)
    return w4.reshape(*lead, 4 * hp)


# ----------------------------------------------------------------------------
# Fused kernel: hoisted input projection + LSTM recurrence (+ masked store)
#               + BERT-pooler stand-in + entity classifier.
# Grid-less: everything resident in VMEM for these shapes.
# ----------------------------------------------------------------------------
def encoder_kernel(x_ref, m_ref, wih_ref, whh_ref, b_ref, h0_ref, c0_ref,
                   wp_ref, bp_ref, wc_ref, bc_ref,
                   out_ref, hn_ref, cn_ref, pred_ref,
                   ih_ref, *, seq_len, batch, hidden, static_unroll):
    # x_ref  : (S*B, E)   bf16 (time-major, flattened)
    # m_ref  : (S, B, 1)  f32
    # wih    : (E, 4H) bf16   whh: (H, 4H) bf16   b: (1, 4H) f32
    # h0/c0  : (B, H) f32
    # wp/bp/wc/bc : pooler + classifier weights
    # out_ref: (S, B, H) bf16   hn/cn: (B, H) f32   pred: (B, R) f32
    # ih_ref : (S*B, 4H) f32 scratch (precomputed input projection)
    S, B, H = seq_len, batch, hidden

    # --- Prologue 1: hoisted input projection (one big MXU matmul, M = S*B) ---
    ih_ref[...] = (
        jnp.dot(x_ref[...], wih_ref[...], preferred_element_type=jnp.float32)
        + b_ref[...])

    # --- Prologue 2: fused pooler + entity classifier -------------------------
    # Time-major layout => token 0 of every batch row is the first B rows of x.
    x0 = x_ref[0:B, :]
    pooled = jnp.tanh(
        jnp.dot(x0, wp_ref[...], preferred_element_type=jnp.float32)
        + bp_ref[...])
    pred_ref[...] = (
        jnp.dot(pooled.astype(jnp.bfloat16), wc_ref[...],
                preferred_element_type=jnp.float32)
        + bc_ref[...]).astype(pred_ref.dtype)

    whh = whh_ref[...]            # loaded once, reused every step

    def step(s, carry, *, dynamic):
        h, c = carry                                          # f32 (B, H)
        row = s * B
        if dynamic:
            row = pl.multiple_of(row, 8)                      # sublane-aligned
        # Per-step dot is only h @ W_hh; the x-half was hoisted above.
        gates = ih_ref[pl.ds(row, B), :] + jnp.dot(
            h.astype(jnp.bfloat16), whh, preferred_element_type=jnp.float32)
        sig = jax.nn.sigmoid(gates[:, :3 * H])                # [i|f|o] contiguous
        g_g = jnp.tanh(gates[:, 3 * H:])
        i_g = sig[:, 0 * H:1 * H]
        f_g = sig[:, 1 * H:2 * H]
        o_g = sig[:, 2 * H:3 * H]
        c_new = f_g * c + i_g * g_g
        h_new = o_g * jnp.tanh(c_new)
        # Mask folded into the store (no full-slab epilogue pass); bf16 store.
        out_ref[s] = (h_new * m_ref[s]).astype(out_ref.dtype)
        return h_new, c_new

    carry0 = (h0_ref[...], c0_ref[...])
    if static_unroll:                       # short sequences only (S <= 16)
        carry = carry0
        for s in range(S):
            carry = step(s, carry, dynamic=False)
        h_n, c_n = carry
    else:                                   # modest unroll keeps LLO visibility
        h_n, c_n = jax.lax.fori_loop(
            0, S, functools.partial(step, dynamic=True), carry0, unroll=8)

    # Final state written once (not every step).
    hn_ref[...] = h_n
    cn_ref[...] = c_n


def encoder_core_forward(embedded, mask, wx, wh, b, h0, c0, wp, bp, wc, bc):
    """embedded: (B,S,E) f32; mask: (B,S) f32.
    Returns outputs (B,S,H) f32, h_n (B,H), c_n (B,H), entity_pred (B,R)."""
    B, S, E = embedded.shape
    H = h0.shape[-1]
    R = wc.shape[-1]
    Bp = _round_up(B, 8)          # sublane density
    Ep = _round_up(E, 128)        # lane density
    Hp = _round_up(H, 128)
    Rp = _round_up(R, 128)

    # Time-major internal layout; single transpose in/out of the kernel.
    x_tm = jnp.transpose(embedded, (1, 0, 2))                       # (S, B, E)
    x_tm = _pad_axis(_pad_axis(x_tm, 1, Bp), 2, Ep)                 # (S, Bp, Ep)
    x_2d = x_tm.reshape(S * Bp, Ep).astype(jnp.bfloat16)            # (S*Bp, Ep)

    m_tm = _pad_axis(jnp.transpose(mask, (1, 0)), 1, Bp)            # (S, Bp)
    m_tm = m_tm.astype(jnp.float32)[:, :, None]                     # (S, Bp, 1)

    h0_p = _pad_axis(_pad_axis(h0, 0, Bp), 1, Hp).astype(jnp.float32)
    c0_p = _pad_axis(_pad_axis(c0, 0, Bp), 1, Hp).astype(jnp.float32)

    # Gate-packed weights in [i, f, o, g] order, per-gate padded to Hp lanes.
    wih = _pad_axis(_pack_gates(wx, H, Hp), 0, Ep).astype(jnp.bfloat16)   # (Ep, 4Hp)
    whh = _pad_axis(_pack_gates(wh, H, Hp), 0, Hp).astype(jnp.bfloat16)   # (Hp, 4Hp)
    b_p = _pack_gates(b.reshape(1, -1), H, Hp).astype(jnp.float32)        # (1, 4Hp)

    wp_p = _pad_axis(_pad_axis(wp, 0, Ep), 1, Ep).astype(jnp.bfloat16)
    bp_p = _pad_axis(bp.reshape(1, -1), 1, Ep).astype(jnp.float32)
    wc_p = _pad_axis(_pad_axis(wc, 0, Ep), 1, Rp).astype(jnp.bfloat16)
    bc_p = _pad_axis(bc.reshape(1, -1), 1, Rp).astype(jnp.float32)

    inputs = (x_2d, m_tm, wih, whh, b_p, h0_p, c0_p, wp_p, bp_p, wc_p, bc_p)

    # Advisory cost estimate + scoped-VMEM sizing.
    flops = (2 * S * Bp * Ep * 4 * Hp          # hoisted input projection
             + 2 * S * Bp * Hp * 4 * Hp        # per-step recurrent dot
             + 2 * Bp * Ep * Ep + 2 * Bp * Ep * Rp)
    transcendentals = S * Bp * 5 * Hp + Bp * Ep
    in_bytes = sum(int(a.size) * a.dtype.itemsize for a in inputs)
    out_bytes = S * Bp * Hp * 2 + 2 * Bp * Hp * 4 + Bp * Rp * 4
    scratch_bytes = S * Bp * 4 * Hp * 4
    vmem_need = in_bytes + out_bytes + scratch_bytes
    vmem_limit = int(min(max(2 * vmem_need, 32 * 1024 * 1024), 100 * 1024 * 1024))

    kernel = functools.partial(
        encoder_kernel, seq_len=S, batch=Bp, hidden=Hp, static_unroll=S <= 16)

    vmem = pl.BlockSpec(memory_space=pltpu.MemorySpace.VMEM)
    out_p, hn_p, cn_p, pred_p = pl.pallas_call(
        kernel,
        out_shape=(
            jax.ShapeDtypeStruct((S, Bp, Hp), jnp.bfloat16),   # outputs (bf16 slab)
            jax.ShapeDtypeStruct((Bp, Hp), jnp.float32),       # h_n
            jax.ShapeDtypeStruct((Bp, Hp), jnp.float32),       # c_n
            jax.ShapeDtypeStruct((Bp, Rp), jnp.float32),       # entity_pred
        ),
        in_specs=[vmem] * len(inputs),
        out_specs=(vmem, vmem, vmem, vmem),
        scratch_shapes=[pltpu.VMEM((S * Bp, 4 * Hp), jnp.float32)],
        compiler_params=pltpu.CompilerParams(vmem_limit_bytes=vmem_limit),
        cost_estimate=pl.CostEstimate(
            flops=flops, transcendentals=transcendentals,
            bytes_accessed=in_bytes + out_bytes),
    )(*inputs)

    outputs = jnp.transpose(out_p[:, :B, :H], (1, 0, 2)).astype(jnp.float32)
    return outputs, hn_p[:B, :H], cn_p[:B, :H], pred_p[:B, :R]


# ----------------------------------------------------------------------------
# EncoderRNN forward (glue + kernel)
# ----------------------------------------------------------------------------
def encoder_rnn_forward(params, inp_q, input_mask, token_types, rng_key):
    """
    inp_q:       (B, S) int32 token ids
    input_mask:  (B, S) {0,1}
    token_types: (B, S) int32 (unused by the BERT stand-in)
    rng_key:     PRNG key for h0/c0 (init_weights: torch.rand analogue)
    returns (outputs (B,S,H), (h_n (1,B,H), c_n (1,B,H)), entity_pred (B,out_rel))
    """
    del token_types  # TODO(synk): token_type embeddings are part of the real BERT only.

    # --- BERT stand-in: embedding lookup (pooler is fused into the kernel) ---
    embedded = params["emb_table"][inp_q]                      # (B, S, E) f32
    # embedding_dropout: inference-mode identity.

    # --- init_weights: h0, c0 ~ Uniform[0,1) ---
    B = inp_q.shape[0]
    H = params["wh"].shape[0]
    k0, k1 = jax.random.split(rng_key)
    h0 = jax.random.uniform(k0, (B, H), dtype=jnp.float32)
    c0 = jax.random.uniform(k1, (B, H), dtype=jnp.float32)

    mask_f = input_mask.astype(jnp.float32)

    outputs, h_n, c_n, entity_pred = encoder_core_forward(
        embedded, mask_f, params["wx"], params["wh"], params["b_lstm"], h0, c0,
        params["wp"], params["bp"], params["wc"], params["bc"])

    hidden = (h_n[None, :, :], c_n[None, :, :])                # (n_layers=1, B, H)
    return outputs, hidden, entity_pred


def make_params(key, vocab, emb_size, hidden_size, out_rel):
    ks = jax.random.split(key, 8)
    scale = 0.1
    return {
        "emb_table": scale * jax.random.normal(ks[0], (vocab, emb_size), jnp.float32),
        # LSTM weights, already transposed for x @ W layout (PyTorch gate order):
        #   wx = W_ih^T (E, 4H), wh = W_hh^T (H, 4H), b = b_ih + b_hh (4H,)
        "wx": scale * jax.random.normal(ks[1], (emb_size, 4 * hidden_size), jnp.float32),
        "wh": scale * jax.random.normal(ks[2], (hidden_size, 4 * hidden_size), jnp.float32),
        "b_lstm": scale * jax.random.normal(ks[3], (4 * hidden_size,), jnp.float32),
        # BERT pooler stand-in
        "wp": scale * jax.random.normal(ks[4], (emb_size, emb_size), jnp.float32),
        "bp": scale * jax.random.normal(ks[5], (emb_size,), jnp.float32),
        # entity_classifier: Linear(emb_size, out_rel)
        "wc": scale * jax.random.normal(ks[6], (emb_size, out_rel), jnp.float32),
        "bc": scale * jax.random.normal(ks[7], (out_rel,), jnp.float32),
    }


if __name__ == "__main__":
    B, S, E, H, OUT_REL, VOCAB = 2, 8, 32, 32, 8, 64

    key = jax.random.PRNGKey(0)
    k_ids, k_params, k_state = jax.random.split(key, 3)

    inp_q = jax.random.randint(k_ids, (B, S), 0, VOCAB, dtype=jnp.int32)
    input_mask = jnp.concatenate(
        [jnp.ones((B, S - 2), jnp.int32), jnp.zeros((B, 2), jnp.int32)], axis=1)
    token_types = jnp.zeros((B, S), jnp.int32)

    params = make_params(k_params, VOCAB, E, H, OUT_REL)

    fwd = jax.jit(encoder_rnn_forward)
    outputs, (h_n, c_n), entity_pred = fwd(params, inp_q, input_mask, token_types, k_state)

    jax.block_until_ready((outputs, h_n, c_n, entity_pred))

    assert outputs.shape == (B, S, H)
    assert h_n.shape == (1, B, H) and c_n.shape == (1, B, H)
    assert entity_pred.shape == (B, OUT_REL)
    # masked timesteps must be exactly zero
    assert bool(jnp.all(outputs[:, -2:, :] == 0.0))
    assert bool(jnp.all(jnp.isfinite(outputs))) and bool(jnp.all(jnp.isfinite(entity_pred)))

    print("KERNEL_OK")
</pallas_src>

<mosaic_0001>
module attributes {stable_mosaic.version = 11 : i64} {
  func.func @encoder_kernel(%arg0: memref<64x128xbf16, #tpu.memory_space<vmem>>, %arg1: memref<8x8x1xf32, #tpu.memory_space<vmem>>, %arg2: memref<128x512xbf16, #tpu.memory_space<vmem>>, %arg3: memref<128x512xbf16, #tpu.memory_space<vmem>>, %arg4: memref<1x512xf32, #tpu.memory_space<vmem>>, %arg5: memref<8x128xf32, #tpu.memory_space<vmem>>, %arg6: memref<8x128xf32, #tpu.memory_space<vmem>>, %arg7: memref<128x128xbf16, #tpu.memory_space<vmem>>, %arg8: memref<1x128xf32, #tpu.memory_space<vmem>>, %arg9: memref<128x128xbf16, #tpu.memory_space<vmem>>, %arg10: memref<1x128xf32, #tpu.memory_space<vmem>>, %arg11: memref<8x8x128xbf16, #tpu.memory_space<vmem>>, %arg12: memref<8x128xf32, #tpu.memory_space<vmem>>, %arg13: memref<8x128xf32, #tpu.memory_space<vmem>>, %arg14: memref<8x128xf32, #tpu.memory_space<vmem>>, %arg15: memref<64x512xf32, #tpu.memory_space<vmem>>) attributes {dimension_semantics = [], scalar_prefetch = 0 : i64, scratch_operands = 1 : i64, tpu.core_type = #tpu.core_type<tc>} {
    %c0 = arith.constant 0 : index
    %c0_0 = arith.constant 0 : index
    %0 = vector.load %arg0[%c0, %c0_0] : memref<64x128xbf16, #tpu.memory_space<vmem>>, vector<64x128xbf16>
    %c0_1 = arith.constant 0 : index
    %c0_2 = arith.constant 0 : index
    %1 = vector.load %arg2[%c0_1, %c0_2] : memref<128x512xbf16, #tpu.memory_space<vmem>>, vector<128x512xbf16>
    %cst = arith.constant dense<0.000000e+00> : vector<64x512xf32>
    %2 = tpu.matmul %0, %1, %cst {dimension_numbers = #tpu.dot_dimension_numbers<[1], [0], [0], [1], [0, 0, 1, 1], [], []>} : vector<64x128xbf16>, vector<128x512xbf16>, vector<64x512xf32> -> vector<64x512xf32>
    %c0_3 = arith.constant 0 : index
    %c0_4 = arith.constant 0 : index
    %3 = vector.load %arg4[%c0_3, %c0_4] : memref<1x512xf32, #tpu.memory_space<vmem>>, vector<1x512xf32>
    %4 = vector.broadcast %3 : vector<1x512xf32> to vector<64x512xf32>
    %5 = arith.addf %2, %4 : vector<64x512xf32>
    %c0_5 = arith.constant 0 : index
    %c0_6 = arith.constant 0 : index
    %6 = vector.load %arg15[%c0_5, %c0_6] : memref<64x512xf32, #tpu.memory_space<vmem>>, vector<64x512xf32>
    tpu.vector_store %arg15[%c0_5, %c0_6], %5 {strides = array<i32>} : memref<64x512xf32, #tpu.memory_space<vmem>>, vector<64x512xf32>,
    %c0_7 = arith.constant 0 : index
    %c0_8 = arith.constant 0 : index
    %7 = vector.load %arg0[%c0_7, %c0_8] : memref<64x128xbf16, #tpu.memory_space<vmem>>, vector<8x128xbf16>
    %c0_9 = arith.constant 0 : index
    %c0_10 = arith.constant 0 : index
    %8 = vector.load %arg7[%c0_9, %c0_10] : memref<128x128xbf16, #tpu.memory_space<vmem>>, vector<128x128xbf16>
    %cst_11 = arith.constant dense<0.000000e+00> : vector<8x128xf32>
    %9 = tpu.matmul %7, %8, %cst_11 {dimension_numbers = #tpu.dot_dimension_numbers<[1], [0], [0], [1], [0, 0, 1, 1], [], []>} : vector<8x128xbf16>, vector<128x128xbf16>, vector<8x128xf32> -> vector<8x128xf32>
    %c0_12 = arith.constant 0 : index
    %c0_13 = arith.constant 0 : index
    %10 = vector.load %arg8[%c0_12, %c0_13] : memref<1x128xf32, #tpu.memory_space<vmem>>, vector<1x128xf32>
    %11 = vector.broadcast %10 : vector<1x128xf32> to vector<8x128xf32>
    %12 = arith.addf %9, %11 : vector<8x128xf32>
    %13 = math.tanh %12 : vector<8x128xf32>
    %14 = arith.truncf %13 : vector<8x128xf32> to vector<8x128xbf16>
    %c0_14 = arith.constant 0 : index
    %c0_15 = arith.constant 0 : index
    %15 = vector.load %arg9[%c0_14, %c0_15] : memref<128x128xbf16, #tpu.memory_space<vmem>>, vector<128x128xbf16>
    %cst_16 = arith.constant dense<0.000000e+00> : vector<8x128xf32>
    %16 = tpu.matmul %14, %15, %cst_16 {dimension_numbers = #tpu.dot_dimension_numbers<[1], [0], [0], [1], [0, 0, 1, 1], [], []>} : vector<8x128xbf16>, vector<128x128xbf16>, vector<8x128xf32> -> vector<8x128xf32>
    %c0_17 = arith.constant 0 : index
    %c0_18 = arith.constant 0 : index
    %17 = vector.load %arg10[%c0_17, %c0_18] : memref<1x128xf32, #tpu.memory_space<vmem>>, vector<1x128xf32>
    %18 = vector.broadcast %17 : vector<1x128xf32> to vector<8x128xf32>
    %19 = arith.addf %16, %18 : vector<8x128xf32>
    %c0_19 = arith.constant 0 : index
    %c0_20 = arith.constant 0 : index
    %20 = vector.load %arg14[%c0_19, %c0_20] : memref<8x128xf32, #tpu.memory_space<vmem>>, vector<8x128xf32>
    tpu.vector_store %arg14[%c0_19, %c0_20], %19 {strides = array<i32>} : memref<8x128xf32, #tpu.memory_space<vmem>>, vector<8x128xf32>,
    %c0_21 = arith.constant 0 : index
    %c0_22 = arith.constant 0 : index
    %21 = vector.load %arg3[%c0_21, %c0_22] : memref<128x512xbf16, #tpu.memory_space<vmem>>, vector<128x512xbf16>
    %c0_23 = arith.constant 0 : index
    %c0_24 = arith.constant 0 : index
    %22 = vector.load %arg5[%c0_23, %c0_24] : memref<8x128xf32, #tpu.memory_space<vmem>>, vector<8x128xf32>
    %c0_25 = arith.constant 0 : index
    %c0_26 = arith.constant 0 : index
    %23 = vector.load %arg6[%c0_25, %c0_26] : memref<8x128xf32, #tpu.memory_space<vmem>>, vector<8x128xf32>
    %c0_27 = arith.constant 0 : index
    %c0_28 = arith.constant 0 : index
    %24 = vector.load %arg15[%c0_27, %c0_28] : memref<64x512xf32, #tpu.memory_space<vmem>>, vector<8x512xf32>
    %25 = arith.truncf %22 : vector<8x128xf32> to vector<8x128xbf16>
    %cst_29 = arith.constant dense<0.000000e+00> : vector<8x512xf32>
    %26 = tpu.matmul %25, %21, %cst_29 {dimension_numbers = #tpu.dot_dimension_numbers<[1], [0], [0], [1], [0, 0, 1, 1], [], []>} : vector<8x128xbf16>, vector<128x512xbf16>, vector<8x512xf32> -> vector<8x512xf32>
    %27 = arith.addf %24, %26 : vector<8x512xf32>
    %28 = vector.extract_strided_slice %27 {offsets = [0, 0], sizes = [8, 384], strides = [1, 1]} : vector<8x512xf32> to vector<8x384xf32>
    %29 = arith.negf %28 : vector<8x384xf32>
    %30 = math.exp %29 : vector<8x384xf32>
    %cst_30 = arith.constant 1.000000e+00 : f32
    %31 = vector.broadcast %cst_30 : f32 to vector<8x384xf32>
    %32 = arith.addf %31, %30 : vector<8x384xf32>
    %33 = arith.divf %31, %32 : vector<8x384xf32>
    %34 = vector.extract_strided_slice %27 {offsets = [0, 384], sizes = [8, 128], strides = [1, 1]} : vector<8x512xf32> to vector<8x128xf32>
    %35 = math.tanh %34 : vector<8x128xf32>
    %36 = vector.extract_strided_slice %33 {offsets = [0, 0], sizes = [8, 128], strides = [1, 1]} : vector<8x384xf32> to vector<8x128xf32>
    %37 = vector.extract_strided_slice %33 {offsets = [0, 128], sizes = [8, 128], strides = [1, 1]} : vector<8x384xf32> to vector<8x128xf32>
    %38 = vector.extract_strided_slice %33 {offsets = [0, 256], sizes = [8, 128], strides = [1, 1]} : vector<8x384xf32> to vector<8x128xf32>
    %39 = arith.mulf %37, %23 : vector<8x128xf32>
    %40 = arith.mulf %36, %35 : vector<8x128xf32>
    %41 = arith.addf %39, %40 : vector<8x128xf32>
    %42 = math.tanh %41 : vector<8x128xf32>
    %43 = arith.mulf %38, %42 : vector<8x128xf32>
    %c0_31 = arith.constant 0 : index
    %c0_32 = arith.constant 0 : index
    %c0_33 = arith.constant 0 : index
    %44 = vector.load %arg1[%c0_31, %c0_32, %c0_33] : memref<8x8x1xf32, #tpu.memory_space<vmem>>, vector<1x8x1xf32>
    %45 = vector.shape_cast %44 : vector<1x8x1xf32> to vector<8x1xf32>
    %46 = vector.broadcast %45 : vector<8x1xf32> to vector<8x128xf32>
    %47 = arith.mulf %43, %46 : vector<8x128xf32>
    %48 = arith.truncf %47 : vector<8x128xf32> to vector<8x128xbf16>
    %c0_34 = arith.constant 0 : index
    %c0_35 = arith.constant 0 : index
    %c0_36 = arith.constant 0 : index
    %49 = vector.load %arg11[%c0_34, %c0_35, %c0_36] : memref<8x8x128xbf16, #tpu.memory_space<vmem>>, vector<1x8x128xbf16>
    %50 = vector.shape_cast %49 : vector<1x8x128xbf16> to vector<8x128xbf16>
    %51 = vector.shape_cast %48 : vector<8x128xbf16> to vector<1x8x128xbf16>
    tpu.vector_store %arg11[%c0_34, %c0_35, %c0_36], %51 {strides = array<i32>} : memref<8x8x128xbf16, #tpu.memory_space<vmem>>, vector<1x8x128xbf16>,
    %c8 = arith.constant 8 : index
    %c0_37 = arith.constant 0 : index
    %52 = vector.load %arg15[%c8, %c0_37] : memref<64x512xf32, #tpu.memory_space<vmem>>, vector<8x512xf32>
    %53 = arith.truncf %43 : vector<8x128xf32> to vector<8x128xbf16>
    %cst_38 = arith.constant dense<0.000000e+00> : vector<8x512xf32>
    %54 = tpu.matmul %53, %21, %cst_38 {dimension_numbers = #tpu.dot_dimension_numbers<[1], [0], [0], [1], [0, 0, 1, 1], [], []>} : vector<8x128xbf16>, vector<128x512xbf16>, vector<8x512xf32> -> vector<8x512xf32>
    %55 = arith.addf %52, %54 : vector<8x512xf32>
    %56 = vector.extract_strided_slice %55 {offsets = [0, 0], sizes = [8, 384], strides = [1, 1]} : vector<8x512xf32> to vector<8x384xf32>
    %57 = arith.negf %56 : vector<8x384xf32>
    %58 = math.exp %57 : vector<8x384xf32>
    %cst_39 = arith.constant 1.000000e+00 : f32
    %59 = vector.broadcast %cst_39 : f32 to vector<8x384xf32>
    %60 = arith.addf %59, %58 : vector<8x384xf32>
    %61 = arith.divf %59, %60 : vector<8x384xf32>
    %62 = vector.extract_strided_slice %55 {offsets = [0, 384], sizes = [8, 128], strides = [1, 1]} : vector<8x512xf32> to vector<8x128xf32>
    %63 = math.tanh %62 : vector<8x128xf32>
    %64 = vector.extract_strided_slice %61 {offsets = [0, 0], sizes = [8, 128], strides = [1, 1]} : vector<8x384xf32> to vector<8x128xf32>
    %65 = vector.extract_strided_slice %61 {offsets = [0, 128], sizes = [8, 128], strides = [1, 1]} : vector<8x384xf32> to vector<8x128xf32>
    %66 = vector.extract_strided_slice %61 {offsets = [0, 256], sizes = [8, 128], strides = [1, 1]} : vector<8x384xf32> to vector<8x128xf32>
    %67 = arith.mulf %65, %41 : vector<8x128xf32>
    %68 = arith.mulf %64, %63 : vector<8x128xf32>
    %69 = arith.addf %67, %68 : vector<8x128xf32>
    %70 = math.tanh %69 : vector<8x128xf32>
    %71 = arith.mulf %66, %70 : vector<8x128xf32>
    %c1 = arith.constant 1 : index
    %c0_40 = arith.constant 0 : index
    %c0_41 = arith.constant 0 : index
    %72 = vector.load %arg1[%c1, %c0_40, %c0_41] : memref<8x8x1xf32, #tpu.memory_space<vmem>>, vector<1x8x1xf32>
    %73 = vector.shape_cast %72 : vector<1x8x1xf32> to vector<8x1xf32>
    %74 = vector.broadcast %73 : vector<8x1xf32> to vector<8x128xf32>
    %75 = arith.mulf %71, %74 : vector<8x128xf32>
    %76 = arith.truncf %75 : vector<8x128xf32> to vector<8x128xbf16>
    %c1_42 = arith.constant 1 : index
    %c0_43 = arith.constant 0 : index
    %c0_44 = arith.constant 0 : index
    %77 = vector.load %arg11[%c1_42, %c0_43, %c0_44] : memref<8x8x128xbf16, #tpu.memory_space<vmem>>, vector<1x8x128xbf16>
    %78 = vector.shape_cast %77 : vector<1x8x128xbf16> to vector<8x128xbf16>
    %79 = vector.shape_cast %76 : vector<8x128xbf16> to vector<1x8x128xbf16>
    tpu.vector_store %arg11[%c1_42, %c0_43, %c0_44], %79 {strides = array<i32>} : memref<8x8x128xbf16, #tpu.memory_space<vmem>>, vector<1x8x128xbf16>,
    %c16 = arith.constant 16 : index
    %c0_45 = arith.constant 0 : index
    %80 = vector.load %arg15[%c16, %c0_45] : memref<64x512xf32, #tpu.memory_space<vmem>>, vector<8x512xf32>
    %81 = arith.truncf %71 : vector<8x128xf32> to vector<8x128xbf16>
    %cst_46 = arith.constant dense<0.000000e+00> : vector<8x512xf32>
    %82 = tpu.matmul %81, %21, %cst_46 {dimension_numbers = #tpu.dot_dimension_numbers<[1], [0], [0], [1], [0, 0, 1, 1], [], []>} : vector<8x128xbf16>, vector<128x512xbf16>, vector<8x512xf32> -> vector<8x512xf32>
    %83 = arith.addf %80, %82 : vector<8x512xf32>
    %84 = vector.extract_strided_slice %83 {offsets = [0, 0], sizes = [8, 384], strides = [1, 1]} : vector<8x512xf32> to vector<8x384xf32>
    %85 = arith.negf %84 : vector<8x384xf32>
    %86 = math.exp %85 : vector<8x384xf32>
    %cst_47 = arith.constant 1.000000e+00 : f32
    %87 = vector.broadcast %cst_47 : f32 to vector<8x384xf32>
    %88 = arith.addf %87, %86 : vector<8x384xf32>
    %89 = arith.divf %87, %88 : vector<8x384xf32>
    %90 = vector.extract_strided_slice %83 {offsets = [0, 384], sizes = [8, 128], strides = [1, 1]} : vector<8x512xf32> to vector<8x128xf32>
    %91 = math.tanh %90 : vector<8x128xf32>
    %92 = vector.extract_strided_slice %89 {offsets = [0, 0], sizes = [8, 128], strides = [1, 1]} : vector<8x384xf32> to vector<8x128xf32>
    %93 = vector.extract_strided_slice %89 {offsets = [0, 128], sizes = [8, 128], strides = [1, 1]} : vector<8x384xf32> to vector<8x128xf32>
    %94 = vector.extract_strided_slice %89 {offsets = [0, 256], sizes = [8, 128], strides = [1, 1]} : vector<8x384xf32> to vector<8x128xf32>
    %95 = arith.mulf %93, %69 : vector<8x128xf32>
    %96 = arith.mulf %92, %91 : vector<8x128xf32>
    %97 = arith.addf %95, %96 : vector<8x128xf32>
    %98 = math.tanh %97 : vector<8x128xf32>
    %99 = arith.mulf %94, %98 : vector<8x128xf32>
    %c2 = arith.constant 2 : index
    %c0_48 = arith.constant 0 : index
    %c0_49 = arith.constant 0 : index
    %100 = vector.load %arg1[%c2, %c0_48, %c0_49] : memref<8x8x1xf32, #tpu.memory_space<vmem>>, vector<1x8x1xf32>
    %101 = vector.shape_cast %100 : vector<1x8x1xf32> to vector<8x1xf32>
    %102 = vector.broadcast %101 : vector<8x1xf32> to vector<8x128xf32>
    %103 = arith.mulf %99, %102 : vector<8x128xf32>
    %104 = arith.truncf %103 : vector<8x128xf32> to vector<8x128xbf16>
    %c2_50 = arith.constant 2 : index
    %c0_51 = arith.constant 0 : index
    %c0_52 = arith.constant 0 : index
    %105 = vector.load %arg11[%c2_50, %c0_51, %c0_52] : memref<8x8x128xbf16, #tpu.memory_space<vmem>>, vector<1x8x128xbf16>
    %106 = vector.shape_cast %105 : vector<1x8x128xbf16> to vector<8x128xbf16>
    %107 = vector.shape_cast %104 : vector<8x128xbf16> to vector<1x8x128xbf16>
    tpu.vector_store %arg11[%c2_50, %c0_51, %c0_52], %107 {strides = array<i32>} : memref<8x8x128xbf16, #tpu.memory_space<vmem>>, vector<1x8x128xbf16>,
    %c24 = arith.constant 24 : index
    %c0_53 = arith.constant 0 : index
    %108 = vector.load %arg15[%c24, %c0_53] : memref<64x512xf32, #tpu.memory_space<vmem>>, vector<8x512xf32>
    %109 = arith.truncf %99 : vector<8x128xf32> to vector<8x128xbf16>
    %cst_54 = arith.constant dense<0.000000e+00> : vector<8x512xf32>
    %110 = tpu.matmul %109, %21, %cst_54 {dimension_numbers = #tpu.dot_dimension_numbers<[1], [0], [0], [1], [0, 0, 1, 1], [], []>} : vector<8x128xbf16>, vector<128x512xbf16>, vector<8x512xf32> -> vector<8x512xf32>
    %111 = arith.addf %108, %110 : vector<8x512xf32>
    %112 = vector.extract_strided_slice %111 {offsets = [0, 0], sizes = [8, 384], strides = [1, 1]} : vector<8x512xf32> to vector<8x384xf32>
    %113 = arith.negf %112 : vector<8x384xf32>
    %114 = math.exp %113 : vector<8x384xf32>
    %cst_55 = arith.constant 1.000000e+00 : f32
    %115 = vector.broadcast %cst_55 : f32 to vector<8x384xf32>
    %116 = arith.addf %115, %114 : vector<8x384xf32>
    %117 = arith.divf %115, %116 : vector<8x384xf32>
    %118 = vector.extract_strided_slice %111 {offsets = [0, 384], sizes = [8, 128], strides = [1, 1]} : vector<8x512xf32> to vector<8x128xf32>
    %119 = math.tanh %118 : vector<8x128xf32>
    %120 = vector.extract_strided_slice %117 {offsets = [0, 0], sizes = [8, 128], strides = [1, 1]} : vector<8x384xf32> to vector<8x128xf32>
    %121 = vector.extract_strided_slice %117 {offsets = [0, 128], sizes = [8, 128], strides = [1, 1]} : vector<8x384xf32> to vector<8x128xf32>
    %122 = vector.extract_strided_slice %117 {offsets = [0, 256], sizes = [8, 128], strides = [1, 1]} : vector<8x384xf32> to vector<8x128xf32>
    %123 = arith.mulf %121, %97 : vector<8x128xf32>
    %124 = arith.mulf %120, %119 : vector<8x128xf32>
    %125 = arith.addf %123, %124 : vector<8x128xf32>
    %126 = math.tanh %125 : vector<8x128xf32>
    %127 = arith.mulf %122, %126 : vector<8x128xf32>
    %c3 = arith.constant 3 : index
    %c0_56 = arith.constant 0 : index
    %c0_57 = arith.constant 0 : index
    %128 = vector.load %arg1[%c3, %c0_56, %c0_57] : memref<8x8x1xf32, #tpu.memory_space<vmem>>, vector<1x8x1xf32>
    %129 = vector.shape_cast %128 : vector<1x8x1xf32> to vector<8x1xf32>
    %130 = vector.broadcast %129 : vector<8x1xf32> to vector<8x128xf32>
    %131 = arith.mulf %127, %130 : vector<8x128xf32>
    %132 = arith.truncf %131 : vector<8x128xf32> to vector<8x128xbf16>
    %c3_58 = arith.constant 3 : index
    %c0_59 = arith.constant 0 : index
    %c0_60 = arith.constant 0 : index
    %133 = vector.load %arg11[%c3_58, %c0_59, %c0_60] : memref<8x8x128xbf16, #tpu.memory_space<vmem>>, vector<1x8x128xbf16>
    %134 = vector.shape_cast %133 : vector<1x8x128xbf16> to vector<8x128xbf16>
    %135 = vector.shape_cast %132 : vector<8x128xbf16> to vector<1x8x128xbf16>
    tpu.vector_store %arg11[%c3_58, %c0_59, %c0_60], %135 {strides = array<i32>} : memref<8x8x128xbf16, #tpu.memory_space<vmem>>, vector<1x8x128xbf16>,
    %c32 = arith.constant 32 : index
    %c0_61 = arith.constant 0 : index
    %136 = vector.load %arg15[%c32, %c0_61] : memref<64x512xf32, #tpu.memory_space<vmem>>, vector<8x512xf32>
    %137 = arith.truncf %127 : vector<8x128xf32> to vector<8x128xbf16>
    %cst_62 = arith.constant dense<0.000000e+00> : vector<8x512xf32>
    %138 = tpu.matmul %137, %21, %cst_62 {dimension_numbers = #tpu.dot_dimension_numbers<[1], [0], [0], [1], [0, 0, 1, 1], [], []>} : vector<8x128xbf16>, vector<128x512xbf16>, vector<8x512xf32> -> vector<8x512xf32>
    %139 = arith.addf %136, %138 : vector<8x512xf32>
    %140 = vector.extract_strided_slice %139 {offsets = [0, 0], sizes = [8, 384], strides = [1, 1]} : vector<8x512xf32> to vector<8x384xf32>
    %141 = arith.negf %140 : vector<8x384xf32>
    %142 = math.exp %141 : vector<8x384xf32>
    %cst_63 = arith.constant 1.000000e+00 : f32
    %143 = vector.broadcast %cst_63 : f32 to vector<8x384xf32>
    %144 = arith.addf %143, %142 : vector<8x384xf32>
    %145 = arith.divf %143, %144 : vector<8x384xf32>
    %146 = vector.extract_strided_slice %139 {offsets = [0, 384], sizes = [8, 128], strides = [1, 1]} : vector<8x512xf32> to vector<8x128xf32>
    %147 = math.tanh %146 : vector<8x128xf32>
    %148 = vector.extract_strided_slice %145 {offsets = [0, 0], sizes = [8, 128], strides = [1, 1]} : vector<8x384xf32> to vector<8x128xf32>
    %149 = vector.extract_strided_slice %145 {offsets = [0, 128], sizes = [8, 128], strides = [1, 1]} : vector<8x384xf32> to vector<8x128xf32>
    %150 = vector.extract_strided_slice %145 {offsets = [0, 256], sizes = [8, 128], strides = [1, 1]} : vector<8x384xf32> to vector<8x128xf32>
    %151 = arith.mulf %149, %125 : vector<8x128xf32>
    %152 = arith.mulf %148, %147 : vector<8x128xf32>
    %153 = arith.addf %151, %152 : vector<8x128xf32>
    %154 = math.tanh %153 : vector<8x128xf32>
    %155 = arith.mulf %150, %154 : vector<8x128xf32>
    %c4 = arith.constant 4 : index
    %c0_64 = arith.constant 0 : index
    %c0_65 = arith.constant 0 : index
    %156 = vector.load %arg1[%c4, %c0_64, %c0_65] : memref<8x8x1xf32, #tpu.memory_space<vmem>>, vector<1x8x1xf32>
    %157 = vector.shape_cast %156 : vector<1x8x1xf32> to vector<8x1xf32>
    %158 = vector.broadcast %157 : vector<8x1xf32> to vector<8x128xf32>
    %159 = arith.mulf %155, %158 : vector<8x128xf32>
    %160 = arith.truncf %159 : vector<8x128xf32> to vector<8x128xbf16>
    %c4_66 = arith.constant 4 : index
    %c0_67 = arith.constant 0 : index
    %c0_68 = arith.constant 0 : index
    %161 = vector.load %arg11[%c4_66, %c0_67, %c0_68] : memref<8x8x128xbf16, #tpu.memory_space<vmem>>, vector<1x8x128xbf16>
    %162 = vector.shape_cast %161 : vector<1x8x128xbf16> to vector<8x128xbf16>
    %163 = vector.shape_cast %160 : vector<8x128xbf16> to vector<1x8x128xbf16>
    tpu.vector_store %arg11[%c4_66, %c0_67, %c0_68], %163 {strides = array<i32>} : memref<8x8x128xbf16, #tpu.memory_space<vmem>>, vector<1x8x128xbf16>,
    %c40 = arith.constant 40 : index
    %c0_69 = arith.constant 0 : index
    %164 = vector.load %arg15[%c40, %c0_69] : memref<64x512xf32, #tpu.memory_space<vmem>>, vector<8x512xf32>
    %165 = arith.truncf %155 : vector<8x128xf32> to vector<8x128xbf16>
    %cst_70 = arith.constant dense<0.000000e+00> : vector<8x512xf32>
    %166 = tpu.matmul %165, %21, %cst_70 {dimension_numbers = #tpu.dot_dimension_numbers<[1], [0], [0], [1], [0, 0, 1, 1], [], []>} : vector<8x128xbf16>, vector<128x512xbf16>, vector<8x512xf32> -> vector<8x512xf32>
    %167 = arith.addf %164, %166 : vector<8x512xf32>
    %168 = vector.extract_strided_slice %167 {offsets = [0, 0], sizes = [8, 384], strides = [1, 1]} : vector<8x512xf32> to vector<8x384xf32>
    %169 = arith.negf %168 : vector<8x384xf32>
    %170 = math.exp %169 : vector<8x384xf32>
    %cst_71 = arith.constant 1.000000e+00 : f32
    %171 = vector.broadcast %cst_71 : f32 to vector<8x384xf32>
    %172 = arith.addf %171, %170 : vector<8x384xf32>
    %173 = arith.divf %171, %172 : vector<8x384xf32>
    %174 = vector.extract_strided_slice %167 {offsets = [0, 384], sizes = [8, 128], strides = [1, 1]} : vector<8x512xf32> to vector<8x128xf32>
    %175 = math.tanh %174 : vector<8x128xf32>
    %176 = vector.extract_strided_slice %173 {offsets = [0, 0], sizes = [8, 128], strides = [1, 1]} : vector<8x384xf32> to vector<8x128xf32>
    %177 = vector.extract_strided_slice %173 {offsets = [0, 128], sizes = [8, 128], strides = [1, 1]} : vector<8x384xf32> to vector<8x128xf32>
    %178 = vector.extract_strided_slice %173 {offsets = [0, 256], sizes = [8, 128], strides = [1, 1]} : vector<8x384xf32> to vector<8x128xf32>
    %179 = arith.mulf %177, %153 : vector<8x128xf32>
    %180 = arith.mulf %176, %175 : vector<8x128xf32>
    %181 = arith.addf %179, %180 : vector<8x128xf32>
    %182 = math.tanh %181 : vector<8x128xf32>
    %183 = arith.mulf %178, %182 : vector<8x128xf32>
    %c5 = arith.constant 5 : index
    %c0_72 = arith.constant 0 : index
    %c0_73 = arith.constant 0 : index
    %184 = vector.load %arg1[%c5, %c0_72, %c0_73] : memref<8x8x1xf32, #tpu.memory_space<vmem>>, vector<1x8x1xf32>
    %185 = vector.shape_cast %184 : vector<1x8x1xf32> to vector<8x1xf32>
    %186 = vector.broadcast %185 : vector<8x1xf32> to vector<8x128xf32>
    %187 = arith.mulf %183, %186 : vector<8x128xf32>
    %188 = arith.truncf %187 : vector<8x128xf32> to vector<8x128xbf16>
    %c5_74 = arith.constant 5 : index
    %c0_75 = arith.constant 0 : index
    %c0_76 = arith.constant 0 : index
    %189 = vector.load %arg11[%c5_74, %c0_75, %c0_76] : memref<8x8x128xbf16, #tpu.memory_space<vmem>>, vector<1x8x128xbf16>
    %190 = vector.shape_cast %189 : vector<1x8x128xbf16> to vector<8x128xbf16>
    %191 = vector.shape_cast %188 : vector<8x128xbf16> to vector<1x8x128xbf16>
    tpu.vector_store %arg11[%c5_74, %c0_75, %c0_76], %191 {strides = array<i32>} : memref<8x8x128xbf16, #tpu.memory_space<vmem>>, vector<1x8x128xbf16>,
    %c48 = arith.constant 48 : index
    %c0_77 = arith.constant 0 : index
    %192 = vector.load %arg15[%c48, %c0_77] : memref<64x512xf32, #tpu.memory_space<vmem>>, vector<8x512xf32>
    %193 = arith.truncf %183 : vector<8x128xf32> to vector<8x128xbf16>
    %cst_78 = arith.constant dense<0.000000e+00> : vector<8x512xf32>
    %194 = tpu.matmul %193, %21, %cst_78 {dimension_numbers = #tpu.dot_dimension_numbers<[1], [0], [0], [1], [0, 0, 1, 1], [], []>} : vector<8x128xbf16>, vector<128x512xbf16>, vector<8x512xf32> -> vector<8x512xf32>
    %195 = arith.addf %192, %194 : vector<8x512xf32>
    %196 = vector.extract_strided_slice %195 {offsets = [0, 0], sizes = [8, 384], strides = [1, 1]} : vector<8x512xf32> to vector<8x384xf32>
    %197 = arith.negf %196 : vector<8x384xf32>
    %198 = math.exp %197 : vector<8x384xf32>
    %cst_79 = arith.constant 1.000000e+00 : f32
    %199 = vector.broadcast %cst_79 : f32 to vector<8x384xf32>
    %200 = arith.addf %199, %198 : vector<8x384xf32>
    %201 = arith.divf %199, %200 : vector<8x384xf32>
    %202 = vector.extract_strided_slice %195 {offsets = [0, 384], sizes = [8, 128], strides = [1, 1]} : vector<8x512xf32> to vector<8x128xf32>
    %203 = math.tanh %202 : vector<8x128xf32>
    %204 = vector.extract_strided_slice %201 {offsets = [0, 0], sizes = [8, 128], strides = [1, 1]} : vector<8x384xf32> to vector<8x128xf32>
    %205 = vector.extract_strided_slice %201 {offsets = [0, 128], sizes = [8, 128], strides = [1, 1]} : vector<8x384xf32> to vector<8x128xf32>
    %206 = vector.extract_strided_slice %201 {offsets = [0, 256], sizes = [8, 128], strides = [1, 1]} : vector<8x384xf32> to vector<8x128xf32>
    %207 = arith.mulf %205, %181 : vector<8x128xf32>
    %208 = arith.mulf %204, %203 : vector<8x128xf32>
    %209 = arith.addf %207, %208 : vector<8x128xf32>
    %210 = math.tanh %209 : vector<8x128xf32>
    %211 = arith.mulf %206, %210 : vector<8x128xf32>
    %c6 = arith.constant 6 : index
    %c0_80 = arith.constant 0 : index
    %c0_81 = arith.constant 0 : index
    %212 = vector.load %arg1[%c6, %c0_80, %c0_81] : memref<8x8x1xf32, #tpu.memory_space<vmem>>, vector<1x8x1xf32>
    %213 = vector.shape_cast %212 : vector<1x8x1xf32> to vector<8x1xf32>
    %214 = vector.broadcast %213 : vector<8x1xf32> to vector<8x128xf32>
    %215 = arith.mulf %211, %214 : vector<8x128xf32>
    %216 = arith.truncf %215 : vector<8x128xf32> to vector<8x128xbf16>
    %c6_82 = arith.constant 6 : index
    %c0_83 = arith.constant 0 : index
    %c0_84 = arith.constant 0 : index
    %217 = vector.load %arg11[%c6_82, %c0_83, %c0_84] : memref<8x8x128xbf16, #tpu.memory_space<vmem>>, vector<1x8x128xbf16>
    %218 = vector.shape_cast %217 : vector<1x8x128xbf16> to vector<8x128xbf16>
    %219 = vector.shape_cast %216 : vector<8x128xbf16> to vector<1x8x128xbf16>
    tpu.vector_store %arg11[%c6_82, %c0_83, %c0_84], %219 {strides = array<i32>} : memref<8x8x128xbf16, #tpu.memory_space<vmem>>, vector<1x8x128xbf16>,
    %c56 = arith.constant 56 : index
    %c0_85 = arith.constant 0 : index
    %220 = vector.load %arg15[%c56, %c0_85] : memref<64x512xf32, #tpu.memory_space<vmem>>, vector<8x512xf32>
    %221 = arith.truncf %211 : vector<8x128xf32> to vector<8x128xbf16>
    %cst_86 = arith.constant dense<0.000000e+00> : vector<8x512xf32>
    %222 = tpu.matmul %221, %21, %cst_86 {dimension_numbers = #tpu.dot_dimension_numbers<[1], [0], [0], [1], [0, 0, 1, 1], [], []>} : vector<8x128xbf16>, vector<128x512xbf16>, vector<8x512xf32> -> vector<8x512xf32>
    %223 = arith.addf %220, %222 : vector<8x512xf32>
    %224 = vector.extract_strided_slice %223 {offsets = [0, 0], sizes = [8, 384], strides = [1, 1]} : vector<8x512xf32> to vector<8x384xf32>
    %225 = arith.negf %224 : vector<8x384xf32>
    %226 = math.exp %225 : vector<8x384xf32>
    %cst_87 = arith.constant 1.000000e+00 : f32
    %227 = vector.broadcast %cst_87 : f32 to vector<8x384xf32>
    %228 = arith.addf %227, %226 : vector<8x384xf32>
    %229 = arith.divf %227, %228 : vector<8x384xf32>
    %230 = vector.extract_strided_slice %223 {offsets = [0, 384], sizes = [8, 128], strides = [1, 1]} : vector<8x512xf32> to vector<8x128xf32>
    %231 = math.tanh %230 : vector<8x128xf32>
    %232 = vector.extract_strided_slice %229 {offsets = [0, 0], sizes = [8, 128], strides = [1, 1]} : vector<8x384xf32> to vector<8x128xf32>
    %233 = vector.extract_strided_slice %229 {offsets = [0, 128], sizes = [8, 128], strides = [1, 1]} : vector<8x384xf32> to vector<8x128xf32>
    %234 = vector.extract_strided_slice %229 {offsets = [0, 256], sizes = [8, 128], strides = [1, 1]} : vector<8x384xf32> to vector<8x128xf32>
    %235 = arith.mulf %233, %209 : vector<8x128xf32>
    %236 = arith.mulf %232, %231 : vector<8x128xf32>
    %237 = arith.addf %235, %236 : vector<8x128xf32>
    %238 = math.tanh %237 : vector<8x128xf32>
    %239 = arith.mulf %234, %238 : vector<8x128xf32>
    %c7 = arith.constant 7 : index
    %c0_88 = arith.constant 0 : index
    %c0_89 = arith.constant 0 : index
    %240 = vector.load %arg1[%c7, %c0_88, %c0_89] : memref<8x8x1xf32, #tpu.memory_space<vmem>>, vector<1x8x1xf32>
    %241 = vector.shape_cast %240 : vector<1x8x1xf32> to vector<8x1xf32>
    %242 = vector.broadcast %241 : vector<8x1xf32> to vector<8x128xf32>
    %243 = arith.mulf %239, %242 : vector<8x128xf32>
    %244 = arith.truncf %243 : vector<8x128xf32> to vector<8x128xbf16>
    %c7_90 = arith.constant 7 : index
    %c0_91 = arith.constant 0 : index
    %c0_92 = arith.constant 0 : index
    %245 = vector.load %arg11[%c7_90, %c0_91, %c0_92] : memref<8x8x128xbf16, #tpu.memory_space<vmem>>, vector<1x8x128xbf16>
    %246 = vector.shape_cast %245 : vector<1x8x128xbf16> to vector<8x128xbf16>
    %247 = vector.shape_cast %244 : vector<8x128xbf16> to vector<1x8x128xbf16>
    tpu.vector_store %arg11[%c7_90, %c0_91, %c0_92], %247 {strides = array<i32>} : memref<8x8x128xbf16, #tpu.memory_space<vmem>>, vector<1x8x128xbf16>,
    %c0_93 = arith.constant 0 : index
    %c0_94 = arith.constant 0 : index
    %248 = vector.load %arg12[%c0_93, %c0_94] : memref<8x128xf32, #tpu.memory_space<vmem>>, vector<8x128xf32>
    tpu.vector_store %arg12[%c0_93, %c0_94], %239 {strides = array<i32>} : memref<8x128xf32, #tpu.memory_space<vmem>>, vector<8x128xf32>,
    %c0_95 = arith.constant 0 : index
    %c0_96 = arith.constant 0 : index
    %249 = vector.load %arg13[%c0_95, %c0_96] : memref<8x128xf32, #tpu.memory_space<vmem>>, vector<8x128xf32>
    tpu.vector_store %arg13[%c0_95, %c0_96], %237 {strides = array<i32>} : memref<8x128xf32, #tpu.memory_space<vmem>>, vector<8x128xf32>,
    return
  }
}

</mosaic_0001>

<bundles_post_ra>
// kernel: encoder_rnn_forward.1
= control target key start
LH: loop header
LB: loop body
LE: loop exit
PB: predicated region body
PF: predicated region fallthrough
CT: control target
= control target key end

     0   :  { %v3446_v1 = vmov 0   ;;  %v2377_v19 = vmov 0.0   ;;  %vm2378_vm0 = vmmov 0   ;;  %s3431_s2 = inlined_call_operand.vmem [shape: bf16[128,512], index: 2, kind: input, shape index: {}]   ;;  %s3432_s0 = inlined_call_operand.vmem [shape: bf16[64,128], index: 0, kind: input, shape index: {}]   ;;  %s3433_s7 = inlined_call_operand.vmem [shape: bf16[128,128], index: 7, kind: input, shape index: {}]   ;;  %s3434_s3 = inlined_call_operand.vmem [shape: bf16[128,512], index: 3, kind: input, shape index: {}]   ;;  %s3435_s5 = inlined_call_operand.vmem [shape: f32[8,128], index: 5, kind: input, shape index: {}]   ;;  %s3436_s9 = inlined_call_operand.vmem [shape: bf16[128,128], index: 9, kind: input, shape index: {}]   ;;  %s3437_s1 = inlined_call_operand.vmem [shape: f32[8,8,1], index: 1, kind: input, shape index: {}]   ;;  %s3438_s4 = inlined_call_operand.vmem [shape: f32[1,512], index: 4, kind: input, shape index: {}]   ;;  %s3439_s8 = inlined_call_operand.vmem [shape: f32[1,128], index: 8, kind: input, shape index: {}]   ;;  %s3440_s10 = inlined_call_operand.vmem [shape: f32[1,128], index: 10, kind: input, shape index: {}]   ;;  %s3441_s14 = inlined_call_operand.vmem [shape: f32[8,128], index: 14, kind: output, shape index: {3}]   ;;  %s3442_s6 = inlined_call_operand.vmem [shape: f32[8,128], index: 6, kind: input, shape index: {}]   ;;  %s3443_s11 = inlined_call_operand.vmem [shape: bf16[8,8,128], index: 11, kind: output, shape index: {0}]   ;;  %s3444_s13 = inlined_call_operand.vmem [shape: f32[8,128], index: 13, kind: output, shape index: {2}]   ;;  %s3445_s12 = inlined_call_operand.vmem [shape: f32[8,128], index: 12, kind: output, shape index: {1}]  }
   0x1   :  { %v2098_v0 = vld [vmem:[%s3431_s2 + $0xe4] ss:$16 sps:$4 sm:$0xff]   ;;  %321 = vmatprep.mubr.bf16.mxu0 %v3446_v1  ;;  %394 = vmatprep.mubr.bf16.mxu1 %v3446_v1  ;;  %v2100_v2 = vld [vmem:[%s3431_s2 + $0xe0] ss:$16 sps:$4 sm:$0xff]   ;;  %v2123_v18 = vld [vmem:[%s3433_s7 + $0x38] sm:$0xff]  }
   0x2   :  { %2096 = vset.pattern.permute.xlu0 %v3446_v1  ;;  %2097 = vset.pattern.permute.xlu1 %v3446_v1  ;;  %v2101_v3 = vld [vmem:[%s3431_s2 + $0xc4] ss:$16 sps:$4 sm:$0xff]   ;;  %v2103_v4 = vld [vmem:[%s3431_s2 + $0xc0] ss:$16 sps:$4 sm:$0xff]   ;;  %v2158_v21 = vld [vmem:[%s3431_s2 + $0xec] ss:$16 sps:$4 sm:$0xff]  }
   0x3   :  { %289 = vmatprep.subr.bf16.mxu0 %v2098_v0  ;;  %v2104_v5 = vld [vmem:[%s3431_s2 + $0xa4] ss:$16 sps:$4 sm:$0xff]   ;;  %v2106_v6 = vld [vmem:[%s3431_s2 + $0xa0] ss:$16 sps:$4 sm:$0xff]   ;;  %v2160_v22 = vld [vmem:[%s3431_s2 + $0xe8] ss:$16 sps:$4 sm:$0xff]   ;;  %362 = vmatprep.subr.bf16.mxu1 %v2158_v21 }
   0x4   :  { %290 = vmatpush1.bf16.msra.mxu0 %v2100_v2  ;;  %v2107_v7 = vld [vmem:[%s3431_s2 + $0x84] ss:$16 sps:$4 sm:$0xff]   ;;  %v2109_v8 = vld [vmem:[%s3431_s2 + $0x80] ss:$16 sps:$4 sm:$0xff]   ;;  %v2161_v23 = vld [vmem:[%s3431_s2 + $0xcc] ss:$16 sps:$4 sm:$0xff]   ;;  %363 = vmatpush1.bf16.msra.mxu1 %v2160_v22 }
   0x5   :  { %291 = vmatprep.subr.bf16.mxu0 %v2101_v3  ;;  %v2110_v9 = vld [vmem:[%s3431_s2 + $0x64] ss:$16 sps:$4 sm:$0xff]   ;;  %v2112_v10 = vld [vmem:[%s3431_s2 + $0x60] ss:$16 sps:$4 sm:$0xff]   ;;  %v2533_v24 = vld [vmem:[%s3432_s0 + $0x8] sm:$0xff]   ;;  %364 = vmatprep.subr.bf16.mxu1 %v2161_v23 }
   0x6   :  { %v2113_v11 = vld [vmem:[%s3431_s2 + $0x44] ss:$16 sps:$4 sm:$0xff]   ;;  %v2115_v12 = vld [vmem:[%s3431_s2 + $0x40] ss:$16 sps:$4 sm:$0xff]   ;;  %v2163_v25 = vld [vmem:[%s3431_s2 + $0xc8] ss:$16 sps:$4 sm:$0xff]  }
   0x7   :  { %v2116_v13 = vld [vmem:[%s3431_s2 + $0x24] ss:$16 sps:$4 sm:$0xff]   ;;  %v2118_v14 = vld [vmem:[%s3431_s2 + $0x20] ss:$16 sps:$4 sm:$0xff]   ;;  %v2164_v26 = vld [vmem:[%s3431_s2 + $0xac] ss:$16 sps:$4 sm:$0xff]  }
   0x8   :  { %292 = vmatpush1.bf16.msra.mxu0 %v2103_v4  ;;  %v2119_v15 = vld [vmem:[%s3431_s2 + $0x4] ss:$16 sps:$4 sm:$0xff]   ;;  %v2121_v16 = vld [vmem:[%s3431_s2] ss:$16 sps:$4 sm:$0xff]   ;;  %v2126_v27 = vld [vmem:[%s3433_s7 + $0x28] sm:$0xff]   ;;  %365 = vmatpush1.bf16.msra.mxu1 %v2163_v25 }
   0x9   :  { %293 = vmatprep.subr.bf16.mxu0 %v2104_v5  ;;  %v2509_v17 = vld [vmem:[%s3432_s0] sm:$0xff]   ;;  %v2124_v20 = vld [vmem:[%s3433_s7 + $0x30] sm:$0xff]   ;;  %v2166_v28 = vld [vmem:[%s3431_s2 + $0xa8] ss:$16 sps:$4 sm:$0xff]   ;;  %366 = vmatprep.subr.bf16.mxu1 %v2164_v26 }
   0xa   :  { %v2167_v29 = vld [vmem:[%s3431_s2 + $0x8c] ss:$16 sps:$4 sm:$0xff]   ;;  %v2127_v30 = vld [vmem:[%s3433_s7 + $0x20] sm:$0xff]   ;;  %v2169_v31 = vld [vmem:[%s3431_s2 + $0x88] ss:$16 sps:$4 sm:$0xff]  }
   0xb   :  { %v2563_v32 = vld [vmem:[%s3432_s0 + $0x10] sm:$0xff]   ;;  %v2170_v33 = vld [vmem:[%s3431_s2 + $0x6c] ss:$16 sps:$4 sm:$0xff]   ;;  %v2172_v35 = vld [vmem:[%s3431_s2 + $0x68] ss:$16 sps:$4 sm:$0xff]  }
   0xc   :  { %294 = vmatpush1.bf16.msra.mxu0 %v2106_v6  ;;  %v2129_v34 = vld [vmem:[%s3433_s7 + $0x18] sm:$0xff]   ;;  %367 = vmatpush1.bf16.msra.mxu1 %v2166_v28  ;;  %v2130_v36 = vld [vmem:[%s3433_s7 + $0x10] sm:$0xff]   ;;  %v2132_v38 = vld [vmem:[%s3433_s7 + $0x8] sm:$0xff]  }
   0xd   :  { %295 = vmatprep.subr.bf16.mxu0 %v2107_v7  ;;  %368 = vmatprep.subr.bf16.mxu1 %v2167_v29  ;;  %v2584_v37 = vld [vmem:[%s3432_s0 + $0x18] sm:$0xff]   ;;  %v2133_v39 = vld [vmem:[%s3433_s7] sm:$0xff]   ;;  %v2183_v3 = vld [vmem:[%s3436_s9 + $0x30] sm:$0xff]  }
   0xe   :  { %v2600_v40 = vld [vmem:[%s3434_s3 + $0xe4] ss:$16 sps:$4 sm:$0xff]   ;;  %v467_v41 = vld [vmem:[%s3432_s0] sm:$0xf]  ;;  %v2173_v59 = vld [vmem:[%s3431_s2 + $0x4c] ss:$16 sps:$4 sm:$0xff]  }
   0xf   :  { %v2608_v42 = vld [vmem:[%s3434_s3 + $0xe0] ss:$16 sps:$4 sm:$0xff]   ;;  %v2614_v43 = vld [vmem:[%s3434_s3 + $0xc4] ss:$16 sps:$4 sm:$0xff]   ;;  %v2175_v60 = vld [vmem:[%s3431_s2 + $0x48] ss:$16 sps:$4 sm:$0xff]  }
  0x10   :  { %296 = vmatpush1.bf16.msra.mxu0 %v2109_v8  ;;  %369 = vmatpush1.bf16.msra.mxu1 %v2169_v31  ;;  %v2620_v44 = vld [vmem:[%s3434_s3 + $0xc0] ss:$16 sps:$4 sm:$0xff]   ;;  %v2627_v45 = vld [vmem:[%s3434_s3 + $0xa4] ss:$16 sps:$4 sm:$0xff]   ;;  %v2176_v61 = vld [vmem:[%s3431_s2 + $0x2c] ss:$16 sps:$4 sm:$0xff]  }
  0x11   :  { %297 = vmatprep.subr.bf16.mxu0 %v2110_v9  ;;  %370 = vmatprep.subr.bf16.mxu1 %v2170_v33  ;;  %v2633_v46 = vld [vmem:[%s3434_s3 + $0xa0] ss:$16 sps:$4 sm:$0xff]   ;;  %v2639_v47 = vld [vmem:[%s3434_s3 + $0x84] ss:$16 sps:$4 sm:$0xff]   ;;  %v2178_v62 = vld [vmem:[%s3431_s2 + $0x28] ss:$16 sps:$4 sm:$0xff]  }
  0x12   :  { %v2645_v48 = vld [vmem:[%s3434_s3 + $0x80] ss:$16 sps:$4 sm:$0xff]   ;;  %v2651_v49 = vld [vmem:[%s3434_s3 + $0x64] ss:$16 sps:$4 sm:$0xff]   ;;  %v2179_v63 = vld [vmem:[%s3431_s2 + $0xc] ss:$16 sps:$4 sm:$0xff]  }
  0x13   :  { %v2657_v50 = vld [vmem:[%s3434_s3 + $0x60] ss:$16 sps:$4 sm:$0xff]   ;;  %v2663_v51 = vld [vmem:[%s3434_s3 + $0x44] ss:$16 sps:$4 sm:$0xff]   ;;  %v2181_v0 = vld [vmem:[%s3431_s2 + $0x8] ss:$16 sps:$4 sm:$0xff]  }
  0x14   :  { %298 = vmatpush1.bf16.msra.mxu0 %v2112_v10  ;;  %371 = vmatpush1.bf16.msra.mxu1 %v2172_v35  ;;  %v2669_v52 = vld [vmem:[%s3434_s3 + $0x40] ss:$16 sps:$4 sm:$0xff]   ;;  %v2675_v53 = vld [vmem:[%s3434_s3 + $0x24] ss:$16 sps:$4 sm:$0xff]   ;;  %v2182_v2 = vld [vmem:[%s3436_s9 + $0x38] sm:$0xff]  }
  0x15   :  { %299 = vmatprep.subr.bf16.mxu0 %v2113_v11  ;;  %v2681_v54 = vld [vmem:[%s3434_s3 + $0x20] ss:$16 sps:$4 sm:$0xff]   ;;  %v2687_v55 = vld [vmem:[%s3434_s3 + $0x4] ss:$16 sps:$4 sm:$0xff]   ;;  %372 = vmatprep.subr.bf16.mxu1 %v2173_v59  ;;  %v2184_v4 = vld [vmem:[%s3436_s9 + $0x28] sm:$0xff]  }
  0x16   :  { %v2693_v56 = vld [vmem:[%s3434_s3] ss:$16 sps:$4 sm:$0xff]   ;;  %v2186_v6 = vld [vmem:[%s3436_s9 + $0x18] sm:$0xff]   ;;  %v2188_v8 = vld [vmem:[%s3436_s9 + $0x8] sm:$0xff]  }
  0x17   :  { %v725_v57 = vld [vmem:[%s3435_s5] sm:$0xff]  ;;  %v2187_v7 = vld [vmem:[%s3436_s9 + $0x10] sm:$0xff]   ;;  %v2783_v10 = vld [vmem:[%s3434_s3 + $0xec] ss:$16 sps:$4 sm:$0xff]  }
  0x18   :  { %300 = vmatpush1.bf16.msra.mxu0 %v2115_v12  ;;  %v2699_v58 = vpack.c.bf16 %v725_v57, %v725_v57  ;;  %373 = vmatpush1.bf16.msra.mxu1 %v2175_v60  ;;  %v2185_v5 = vld [vmem:[%s3436_s9 + $0x20] sm:$0xff]   ;;  %v85_v12 = vlaneseq }
  0x19   :  { %301 = vmatprep.subr.bf16.mxu0 %v2116_v13  ;;  %374 = vmatprep.subr.bf16.mxu1 %v2176_v61  ;;  %v2189_v9 = vld [vmem:[%s3436_s9] sm:$0xff]  }
  0x1a   :  { %v1002_v11 = vld [vmem:[%s3437_s1] sm:$0xff]  ;;  %v2789_v13 = vshrl.u32 %v85_v12, 7 }
  0x1b   :  { %1005 = vperm.xlu0 %2096, %v1002_v11   ;;  %v2834_v11 = vld [vmem:[%s3434_s3 + $0xe8] ss:$16 sps:$4 sm:$0xff]  }
  0x1c   :  { %302 = vmatpush1.bf16.msra.mxu0 %v2118_v14  ;;  %375 = vmatpush1.bf16.msra.mxu1 %v2178_v62  ;;  %v87_v14 = vsub.s32 0, %v2789_v13 }
  0x1d   :  { %303 = vmatprep.subr.bf16.mxu0 %v2119_v15  ;;  %376 = vmatprep.subr.bf16.mxu1 %v2179_v63  ;;  %v2795_v15 = vld [vmem:[%s3438_s4] sm:$0xf] }
  0x20   :  { %304 = vmatpush1.bf16.msra.mxu0 %v2121_v16  ;;  %377 = vmatpush1.bf16.msra.mxu1 %v2181_v0 }
  0x21   :  { %2053 = vmatprep.subr.bf16.mxu0 %v2377_v19  ;;  %2073 = vmatprep.subr.bf16.mxu1 %v2377_v19 }
  0x23   :  { %322 = vmatmul.mubr.bf16.vlgmr.msra.gmra.mxu0 %v2509_v17  ;;  %395 = vmatmul.mubr.bf16.vlgmr.msra.gmra.mxu1 %v2509_v17  ;;  %v91_v17 = vsub.s32 1, %v2789_v13 }
  0x24   :  { %2054 = vmatpush3.bf16.msra.mxu0 %v2123_v18  ;;  %331 = vmatprep.mubr.bf16.mxu0 %v3446_v1 }
  0x25   :  { %2055 = vmatprep.subr.bf16.mxu0 %v2377_v19  ;;  %404 = vmatprep.mubr.bf16.mxu1 %v3446_v1  ;;  %v92_v21 = vrot.slane %v2795_v15, %v91_v17  ;;  %v2845_v17 = vld [vmem:[%s3434_s3 + $0xc8] ss:$16 sps:$4 sm:$0xff]  }
  0x26   :  { %2074 = vmatpush3.bf16.msra.mxu1 %v2182_v2  ;;  %v1947_v2 = vld [vmem:[%s3439_s8] ss:$0 sm:$0xff] }
  0x27   :  { %2075 = vmatprep.subr.bf16.mxu1 %v2377_v19 }
  0x28   :  { %2056 = vmatpush3.bf16.msra.mxu0 %v2124_v20 }
  0x29   :  { %2057 = vmatprep.subr.bf16.mxu0 %v2377_v19 }
  0x2a   :  { %2076 = vmatpush3.bf16.msra.mxu1 %v2183_v3 }
  0x2b   :  { %332 = vmatmul.mubr.bf16.gmra.mxu0 %v2533_v24  ;;  %405 = vmatmul.mubr.bf16.gmra.mxu1 %v2533_v24 }
  0x2c   :  { %2058 = vmatpush3.bf16.msra.mxu0 %v2126_v27  ;;  %341 = vmatprep.mubr.bf16.mxu0 %v3446_v1 }
  0x2d   :  { %2059 = vmatprep.subr.bf16.mxu0 %v2377_v19  ;;  %414 = vmatprep.mubr.bf16.mxu1 %v3446_v1 }
  0x2e   :  { %2077 = vmatprep.subr.bf16.mxu1 %v2377_v19 }
  0x2f   :  { %2078 = vmatpush3.bf16.msra.mxu1 %v2184_v4 }
  0x30   :  { %2060 = vmatpush3.bf16.msra.mxu0 %v2127_v30  ;;  %2079 = vmatprep.subr.bf16.mxu1 %v2377_v19 }
  0x31   :  { %2061 = vmatprep.subr.bf16.mxu0 %v2377_v19 }
  0x33   :  { %342 = vmatmul.mubr.bf16.gmra.mxu0 %v2563_v32  ;;  %415 = vmatmul.mubr.bf16.gmra.mxu1 %v2563_v32 }
  0x34   :  { %2062 = vmatpush3.bf16.msra.mxu0 %v2129_v34  ;;  %351 = vmatprep.mubr.bf16.mxu0 %v3446_v1 }
  0x35   :  { %2063 = vmatprep.subr.bf16.mxu0 %v2377_v19  ;;  %424 = vmatprep.mubr.bf16.mxu1 %v3446_v1 }
  0x36   :  { %2080 = vmatpush3.bf16.msra.mxu1 %v2185_v5 }
  0x37   :  { %2081 = vmatprep.subr.bf16.mxu1 %v2377_v19 }
  0x38   :  { %2064 = vmatpush3.bf16.msra.mxu0 %v2130_v36 }
  0x39   :  { %2065 = vmatprep.subr.bf16.mxu0 %v2377_v19 }
  0x3a   :  { %2082 = vmatpush3.bf16.msra.mxu1 %v2186_v6 }
  0x3b   :  { %352 = vmatmul.mubr.bf16.gmra.mxu0 %v2584_v37  ;;  %2083 = vmatprep.subr.bf16.mxu1 %v2377_v19 }
  0x3c   :  { %2066 = vmatpush3.bf16.msra.mxu0 %v2132_v38  ;;  %2069 = vmatprep.mubr.msk.bf16.mxu0 %vm2378_vm0, %v2377_v19 }
  0x3d   :  { %2067 = vmatprep.subr.bf16.mxu0 %v2377_v19  ;;  %425 = vmatmul.mubr.bf16.gmra.mxu1 %v2584_v37 }
  0x3e   :  { %2089 = vmatprep.mubr.msk.bf16.mxu1 %vm2378_vm0, %v2377_v19  ;;  %2084 = vmatpush3.bf16.msra.mxu1 %v2187_v7 }
  0x3f   :  { %2085 = vmatprep.subr.bf16.mxu1 %v2377_v19 }
  0x40   :  { %2068 = vmatpush3.bf16.msra.mxu0 %v2133_v39 }
  0x41   :  { %892 = vmatprep.subr.bf16.mxu0 %v2600_v40 }
  0x42   :  { %2086 = vmatpush3.bf16.msra.mxu1 %v2188_v8 }
  0x43   :  { %2070 = vmatmul.mubr.bf16.vlgmr.msra.gmra.mxu0 %v467_v41  ;;  %2087 = vmatprep.subr.bf16.mxu1 %v2377_v19  ;;  %v88_v19 = vrot.slane %v2795_v15, %v87_v14  ;;  %v2839_v14 = vld [vmem:[%s3434_s3 + $0xcc] ss:$16 sps:$4 sm:$0xff]  }
  0x44   :  { %893 = vmatpush1.bf16.msra.mxu0 %v2608_v42  ;;  %924 = vmatprep.mubr.bf16.mxu0 %v3446_v1 }
  0x45   :  { %894 = vmatprep.subr.bf16.mxu0 %v2614_v43 }
  0x46   :  { %2088 = vmatpush3.bf16.msra.mxu1 %v2189_v9 }
  0x47   :  { %933 = vmatprep.subr.bf16.mxu1 %v2783_v10 }
  0x48   :  { %895 = vmatpush1.bf16.msra.mxu0 %v2620_v44 }
  0x49   :  { %896 = vmatprep.subr.bf16.mxu0 %v2627_v45 }
  0x4c   :  { %897 = vmatpush1.bf16.msra.mxu0 %v2633_v46 }
  0x4d   :  { %898 = vmatprep.subr.bf16.mxu0 %v2639_v47 }
  0x50   :  { %899 = vmatpush1.bf16.msra.mxu0 %v2645_v48 }
  0x51   :  { %900 = vmatprep.subr.bf16.mxu0 %v2651_v49 }
  0x54   :  { %901 = vmatpush1.bf16.msra.mxu0 %v2657_v50 }
  0x55   :  { %902 = vmatprep.subr.bf16.mxu0 %v2663_v51 }
  0x58   :  { %903 = vmatpush1.bf16.msra.mxu0 %v2669_v52 }
  0x59   :  { %904 = vmatprep.subr.bf16.mxu0 %v2675_v53 }
  0x5c   :  { %905 = vmatpush1.bf16.msra.mxu0 %v2681_v54 }
  0x5d   :  { %906 = vmatprep.subr.bf16.mxu0 %v2687_v55 }
  0x60   :  { %907 = vmatpush1.bf16.msra.mxu0 %v2693_v56 }
  0x61   :  { %1016 = vmatprep.subr.bf16.mxu0 %v2600_v40 }
  0x63   :  { %925 = vmatmul.mubr.bf16.vlgmr.msra.gmra.mxu0 %v2699_v58 }
  0x64   :  { %1017 = vmatpush1.bf16.msra.mxu0 %v2608_v42  ;;  %1048 = vmatprep.mubr.bf16.mxu0 %v3446_v1 }
  0x65   :  { %1018 = vmatprep.subr.bf16.mxu0 %v2614_v43 }
  0x68   :  { %1019 = vmatpush1.bf16.msra.mxu0 %v2620_v44 }
  0x69   :  { %1020 = vmatprep.subr.bf16.mxu0 %v2627_v45 }
  0x6c   :  { %1021 = vmatpush1.bf16.msra.mxu0 %v2633_v46 }
  0x6d   :  { %1022 = vmatprep.subr.bf16.mxu0 %v2639_v47 }
  0x70   :  { %1023 = vmatpush1.bf16.msra.mxu0 %v2645_v48 }
  0x71   :  { %1024 = vmatprep.subr.bf16.mxu0 %v2651_v49 }
  0x74   :  { %1025 = vmatpush1.bf16.msra.mxu0 %v2657_v50 }
  0x75   :  { %1026 = vmatprep.subr.bf16.mxu0 %v2663_v51 }
  0x78   :  { %1027 = vmatpush1.bf16.msra.mxu0 %v2669_v52 }
  0x79   :  { %1028 = vmatprep.subr.bf16.mxu0 %v2675_v53 }
  0x7c   :  { %1029 = vmatpush1.bf16.msra.mxu0 %v2681_v54 }
  0x7d   :  { %1030 = vmatprep.subr.bf16.mxu0 %v2687_v55 }
  0x80   :  { %1031 = vmatpush1.bf16.msra.mxu0 %v2693_v56 }
  0x81   :  { %1142 = vmatprep.subr.bf16.mxu0 %v2600_v40 }
  0xe3   :  { %v323_v16 = vpop.f32.mrf.mxu0 }
  0xe5   :  { %v325_v18 = vpop.f32.mrf.mxu0 }
  0xe7   :  { %v327_v20 = vpop.f32.mrf.mxu0 }
  0xe8   :  { %v2800_v22 = vadd.f32 %v327_v20, %v88_v19  ;;  %v2852_v20 = vld [vmem:[%s3434_s3 + $0xac] ss:$16 sps:$4 sm:$0xff]  }
  0xe9   :  { %v329_v23 = vpop.f32.mrf.mxu0 }
  0xea   :  { %v2802_v24 = vadd.f32 %v329_v23, %v92_v21  ;;  %v2858_v23 = vld [vmem:[%s3434_s3 + $0xa8] ss:$16 sps:$4 sm:$0xff]  }
  0xeb   :  { %v333_v25 = vpop.f32.mrf.mxu0 }
  0xec   :  { %v2804_v26 = vadd.f32 %v333_v25, %v88_v19  ;;  %v2864_v25 = vld [vmem:[%s3434_s3 + $0x8c] ss:$16 sps:$4 sm:$0xff]  }
  0xed   :  { %v335_v27 = vpop.f32.mrf.mxu0 }
  0xee   :  { %v2806_v28 = vadd.f32 %v335_v27, %v92_v21  ;;  %v2870_v27 = vld [vmem:[%s3434_s3 + $0x88] ss:$16 sps:$4 sm:$0xff]  }
  0xef   :  { %v337_v29 = vpop.f32.mrf.mxu0 }
  0xf0   :  { %v2808_v30 = vadd.f32 %v337_v29, %v88_v19  ;;  %v2876_v29 = vld [vmem:[%s3434_s3 + $0x6c] ss:$16 sps:$4 sm:$0xff]  }
  0xf1   :  { %v339_v31 = vpop.f32.mrf.mxu0 }
  0xf2   :  { %v2810_v32 = vadd.f32 %v339_v31, %v92_v21  ;;  %v324_v31 = vadd.f32 %v323_v16, %v88_v19 }
  0xf3   :  { %v343_v33 = vpop.f32.mrf.mxu0 }
  0xf4   :  { %v2812_v34 = vadd.f32 %v343_v33, %v88_v19 }
  0xf5   :  { %v345_v35 = vpop.f32.mrf.mxu0 }
  0xf6   :  { %v2814_v36 = vadd.f32 %v345_v35, %v92_v21  ;;  %v2882_v35 = vld [vmem:[%s3434_s3 + $0x68] ss:$16 sps:$4 sm:$0xff]  }
  0xf7   :  { %v347_v37 = vpop.f32.mrf.mxu0 }
  0xf8   :  { %3449 = vst [vmem:[#allocation3_spill] sm:$0xff] %v2814_v36  ;;  %v2816_v38 = vadd.f32 %v347_v37, %v88_v19  ;;  %v326_v37 = vadd.f32 %v325_v18, %v92_v21 }
  0xf9   :  { %v349_v39 = vpop.f32.mrf.mxu0 }
  0xfa   :  { %3450 = vst [vmem:[#allocation4_spill] sm:$0xff] %v2816_v38  ;;  %v2818_v41 = vadd.f32 %v349_v39, %v92_v21 }
  0xfb   :  { %v353_v57 = vpop.f32.mrf.mxu0 }
  0xfc   :  { %3451 = vst [vmem:[#allocation5_spill] sm:$0xff] %v2818_v41  ;;  %v2820_v59 = vadd.f32 %v353_v57, %v88_v19  ;;  %v2890_v57 = vld [vmem:[%s3434_s3 + $0x4c] ss:$16 sps:$4 sm:$0xff]  }
  0xfd   :  { %v355_v60 = vpop.f32.mrf.mxu0 }
  0xfe   :  { %3452 = vst [vmem:[#allocation6_spill] sm:$0xff] %v2820_v59  ;;  %v2822_v61 = vadd.f32 %v355_v60, %v92_v21 }
  0xff   :  { %v357_v62 = vpop.f32.mrf.mxu0 }
 0x100   :  { %3453 = vst [vmem:[#allocation7_spill] sm:$0xff] %v2822_v61  ;;  %v2824_v63 = vadd.f32 %v357_v62, %v88_v19  ;;  %v2898_v19 = vld [vmem:[%s3434_s3 + $0x48] ss:$16 sps:$4 sm:$0xff]  }
 0x101   :  { %v359_v0 = vpop.f32.mrf.mxu0 }
 0x102   :  { %3454 = vst [vmem:[#allocation8_spill] sm:$0xff] %v2824_v63  ;;  %v2829_v3 = vadd.f32 %v359_v0, %v92_v21  ;;  %v2904_v21 = vld [vmem:[%s3434_s3 + $0x2c] ss:$16 sps:$4 sm:$0xff]   ;;  %v2910_v0 = vld [vmem:[%s3434_s3 + $0x28] ss:$16 sps:$4 sm:$0xff]  }
 0x103   :  { %v573_v4 = vpop.f32.mrf.mxu0 }
 0x104   :  { %3455 = vst [vmem:[#allocation9_spill] sm:$0xff] %v2829_v3  ;;  %v574_v5 = vadd.f32 %v1947_v2, %v573_v4  ;;  %v2916_v2 = vld [vmem:[%s3434_s3 + $0xc] ss:$16 sps:$4 sm:$0xff]   ;;  %v95_v4 = vsub.s32 2, %v2789_v13 }
 0x105   :  { %v2071_v6 = vpop.f32.mrf.mxu0 }
 0x106   :  { %2214 = vtanh.f32 %v574_v5  ;;  %v2923_v5 = vld [vmem:[%s3434_s3 + $0x8] ss:$16 sps:$4 sm:$0xff]   ;;  %v99_v6 = vsub.s32 3, %v2789_v13 }
 0x107   :  { %v576_v7 = vpop.f32.mrf.mxu0 }
 0x108   :  { %v2927_v7 = vpop.f32.mrf.mxu1 }
 0x109   :  { %v2072_v8 = vpop.f32.mrf.mxu0 }
 0x10a   :  { %v2930_v8 = vrot.slane %v2795_v15, %v95_v4 }
 0x113   :  { %v2215_v9 = vpop.eup %2214 }
 0x114   :  { %v580_v12 = vpack.c.bf16 %v2215_v9, %v2215_v9  ;;  %v2932_v9 = vpop.f32.mrf.mxu1 }
 0x116   :  { %2090 = vmatmul.mubr.bf16.vlgmr.msra.gmra.mxu1 %v580_v12  ;;  %v2936_v12 = vrot.slane %v2795_v15, %v99_v6 }
 0x117   :  { %934 = vmatpush1.bf16.msra.mxu1 %v2834_v11  ;;  %965 = vmatprep.mubr.bf16.mxu1 %v3446_v1 }
 0x118   :  { %935 = vmatprep.subr.bf16.mxu1 %v2839_v14  ;;  %3456 = vst [vmem:[#allocation10_spill] sm:$0xff] %v2936_v12 }
 0x11b   :  { %936 = vmatpush1.bf16.msra.mxu1 %v2845_v17 }
 0x11c   :  { %937 = vmatprep.subr.bf16.mxu1 %v2852_v20 }
 0x11f   :  { %938 = vmatpush1.bf16.msra.mxu1 %v2858_v23 }
 0x120   :  { %939 = vmatprep.subr.bf16.mxu1 %v2864_v25 }
 0x123   :  { %940 = vmatpush1.bf16.msra.mxu1 %v2870_v27  ;;  %v926_v33 = vpop.f32.mrf.mxu0 }
 0x124   :  { %v2884_v39 = vadd.f32 %v926_v33, %v324_v31  ;;  %941 = vmatprep.subr.bf16.mxu1 %v2876_v29  ;;  %v400_v31 = vpop.f32.mrf.mxu1 }
 0x125   :  { %v928_v60 = vpop.f32.mrf.mxu0  ;;  %v2940_v33 = vadd.f32 %v400_v31, %v2930_v8 }
 0x126   :  { %v2892_v16 = vadd.f32 %v928_v60, %v326_v37  ;;  %v402_v13 = vpop.f32.mrf.mxu1  ;;  %v1997_v41 = vmul.f32 -1.442695, %v2884_v39 }
 0x127   :  { %942 = vmatpush1.bf16.msra.mxu1 %v2882_v35  ;;  %v930_v18 = vpop.f32.mrf.mxu0  ;;  %v2944_v37 = vadd.f32 %v402_v13, %v2936_v12 }
 0x128   :  { %943 = vmatprep.subr.bf16.mxu1 %v2890_v57  ;;  %v406_v60 = vpop.f32.mrf.mxu1  ;;  %v1998_v38 = vmul.f32 -1.442695, %v2892_v16  ;;  %2216 = vpow2.f32 %v1997_v41 }
 0x129   :  { %v931_v62 = vpop.f32.mrf.mxu0  ;;  %v2950_v15 = vadd.f32 %v406_v60, %v2930_v8 }
 0x12a   :  { %v408_v18 = vpop.f32.mrf.mxu1  ;;  %2218 = vpow2.f32 %v1998_v38 }
 0x12b   :  { %944 = vmatpush1.bf16.msra.mxu1 %v2898_v19  ;;  %v2953_v62 = vadd.f32 %v408_v18, %v2936_v12 }
 0x12c   :  { %945 = vmatprep.subr.bf16.mxu1 %v2904_v21 }
 0x12f   :  { %946 = vmatpush1.bf16.msra.mxu1 %v2910_v0 }
 0x130   :  { %947 = vmatprep.subr.bf16.mxu1 %v2916_v2 }
 0x133   :  { %948 = vmatpush1.bf16.msra.mxu1 %v2923_v5 }
 0x134   :  { %1057 = vmatprep.subr.bf16.mxu1 %v2783_v10 }
 0x136   :  { %966 = vmatmul.mubr.bf16.vlgmr.msra.gmra.mxu1 %v2699_v58  ;;  %v410_v58 = vpop.f32.mrf.mxu1 }
 0x137   :  { %1058 = vmatpush1.bf16.msra.mxu1 %v2834_v11  ;;  %1089 = vmatprep.mubr.bf16.mxu1 %v3446_v1  ;;  %v2958_v4 = vadd.f32 %v410_v58, %v2930_v8 }
 0x138   :  { %1059 = vmatprep.subr.bf16.mxu1 %v2839_v14  ;;  %v412_v6 = vpop.f32.mrf.mxu1 }
 0x139   :  { %v2961_v31 = vadd.f32 %v412_v6, %v2936_v12 }
 0x13a   :  { %v416_v13 = vpop.f32.mrf.mxu1 }
 0x13b   :  { %1060 = vmatpush1.bf16.msra.mxu1 %v2845_v17  ;;  %v2966_v60 = vadd.f32 %v416_v13, %v2930_v8 }
 0x13c   :  { %1061 = vmatprep.subr.bf16.mxu1 %v2852_v20  ;;  %v418_v18 = vpop.f32.mrf.mxu1 }
 0x13d   :  { %3457 = vst [vmem:[#allocation11_spill] sm:$0xff] %v2966_v60  ;;  %v2969_v1 = vadd.f32 %v418_v18, %v2936_v12  ;;  %v397_v60 = vadd.f32 %v2927_v7, %v2930_v8  ;;  %v726_v7 = vld [vmem:[%s3442_s6] sm:$0xff] }
 0x13e   :  { %v420_v58 = vpop.f32.mrf.mxu1 }
 0x13f   :  { %1062 = vmatpush1.bf16.msra.mxu1 %v2858_v23  ;;  %3458 = vst [vmem:[#allocation12_spill] sm:$0xff] %v2969_v1  ;;  %v2974_v6 = vadd.f32 %v420_v58, %v2930_v8 }
 0x140   :  { %1063 = vmatprep.subr.bf16.mxu1 %v2864_v25  ;;  %v422_v3 = vpop.f32.mrf.mxu1 }
 0x141   :  { %3459 = vst [vmem:[#allocation13_spill] sm:$0xff] %v2974_v6  ;;  %v2977_v63 = vadd.f32 %v422_v3, %v2936_v12 }
 0x142   :  { %v426_v13 = vpop.f32.mrf.mxu1 }
 0x143   :  { %1064 = vmatpush1.bf16.msra.mxu1 %v2870_v27  ;;  %3460 = vst [vmem:[#allocation14_spill] sm:$0xff] %v2977_v63  ;;  %v2982_v18 = vadd.f32 %v426_v13, %v2930_v8 }
 0x144   :  { %1065 = vmatprep.subr.bf16.mxu1 %v2876_v29  ;;  %v428_v61 = vpop.f32.mrf.mxu1 }
 0x145   :  { %3461 = vst [vmem:[#allocation15_spill] sm:$0xff] %v2982_v18  ;;  %v2985_v59 = vadd.f32 %v428_v61, %v2936_v12  ;;  %v2003_v61 = vld [vmem:[%s3437_s1 + $0x8] sm:$0xff] }
 0x146   :  { %v430_v58 = vpop.f32.mrf.mxu1  ;;  %1130 = vperm.xlu0 %2096, %v2003_v61   ;;  %v2217_v61 = vpop.eup %2216 }
 0x147   :  { %1066 = vmatpush1.bf16.msra.mxu1 %v2882_v35  ;;  %3462 = vst [vmem:[#allocation16_spill] sm:$0xff] %v2985_v59  ;;  %v2990_v3 = vadd.f32 %v430_v58, %v2930_v8  ;;  %v1956_v58 = vld [vmem:[%s3440_s10] ss:$0 sm:$0xff]  ;;  %v987_v1 = vadd.f32 1.0, %v2217_v61 }
 0x148   :  { %1067 = vmatprep.subr.bf16.mxu1 %v2890_v57  ;;  %v2999_v13 = vpop.f32.mrf.mxu1 }
 0x149   :  { %3463 = vst [vmem:[#allocation17_spill] sm:$0xff] %v2990_v3  ;;  %3464 = vst [vmem:[#allocation18_spill] sm:$0xff] %v2999_v13  ;;  %v2219_v13 = vpop.eup %2218  ;;  %2220 = vrcp.f32 %v987_v1 }
 0x14b   :  { %1068 = vmatpush1.bf16.msra.mxu1 %v2898_v19 }
 0x14c   :  { %1069 = vmatprep.subr.bf16.mxu1 %v2904_v21 }
 0x14f   :  { %1070 = vmatpush1.bf16.msra.mxu1 %v2910_v0 }
 0x150   :  { %1071 = vmatprep.subr.bf16.mxu1 %v2916_v2 }
 0x153   :  { %1072 = vmatpush1.bf16.msra.mxu1 %v2923_v5 }
 0x154   :  { %1183 = vmatprep.subr.bf16.mxu1 %v2783_v10 }
 0x156   :  { %v2221_v41 = vpop.eup %2220 }
 0x1d6   :  { %v686_v3 = vpop.f32.mrf.mxu1 }
 0x1d7   :  { %v687_v59 = vadd.f32 %v1956_v58, %v686_v3  ;;  %v988_v3 = vadd.f32 1.0, %v2219_v13  ;;  %v399_v58 = vadd.f32 %v2932_v9, %v2936_v12 }
 0x1d8   :  { %v2091_v18 = vpop.f32.mrf.mxu1 }
 0x1d9   :  { %692 = vst [vmem:[%s3441_s14] sm:$0xff] %v687_v59  ;;  %2222 = vrcp.f32 %v988_v3 }
 0x1da   :  { %v689_v63 = vpop.f32.mrf.mxu1 }
 0x1dc   :  { %v2092_v6 = vpop.f32.mrf.mxu1 }
 0x1e6   :  { %v2223_v61 = vpop.eup %2222 }
 0x1e7   :  { %v997_v9 = vmul.f32 %v2223_v61, %v726_v7 }
 0x1f6   :  { %v967_v18 = vpop.f32.mrf.mxu1 }
 0x1f7   :  { %v976_v59 = vadd.f32 %v967_v18, %v397_v60 }
 0x1f8   :  { %v969_v63 = vpop.f32.mrf.mxu1 }
 0x1f9   :  { %v1999_v6 = vmul.f32 -1.442695, %v976_v59  ;;  %v977_v39 = vadd.f32 %v969_v63, %v399_v58  ;;  %v1006_v58 = vpop.permute.xlu0 %1005 }
 0x1fa   :  { %v971_v16 = vpop.f32.mrf.mxu1 }
 0x1fb   :  { %2224 = vpow2.f32 %v1999_v6  ;;  %v2008_v16 = vld [vmem:[%s3437_s1 + $0x10] sm:$0xff] }
 0x1fc   :  { %2226 = vtanh.f32 %v977_v39  ;;  %v972_v38 = vpop.f32.mrf.mxu1  ;;  %1256 = vperm.xlu1 %2097, %v2008_v16  }
 0x208   :  { %v2225_v8 = vpop.eup %2224 }
 0x209   :  { %v2227_v13 = vpop.eup %2226  ;;  %v989_v36 = vadd.f32 1.0, %v2225_v8 }
 0x20a   :  { %v998_v60 = vmul.f32 %v2227_v13, %v2221_v41 }
 0x20b   :  { %2228 = vrcp.f32 %v989_v36  ;;  %v3465_v36 = vmov 0  }
 0x20c   :  { %v3016_v18 = vadd.f32 %v998_v60, %v997_v9 }
 0x20e   :  { %2230 = vtanh.f32 %v3016_v18 }
 0x218   :  { %v2229_v1 = vpop.eup %2228 }
 0x21b   :  { %v2231_v3 = vpop.eup %2230 }
 0x21c   :  { %v1001_v59 = vmul.f32 %v2231_v3, %v2229_v1 }
 0x21e   :  { %v1008_v63 = vmul.f32 %v1006_v58, %v1001_v59  ;;  %v1015_v6 = vpack.c.bf16 %v1001_v59, %v1001_v59 }
 0x220   :  { %v1009_v39 = vpack.c.bf16 %v1008_v63, %v1008_v63  ;;  %1049 = vmatmul.mubr.bf16.vlgmr.msra.gmra.mxu0 %v1015_v6  ;;  %1090 = vmatmul.mubr.bf16.vlgmr.msra.gmra.mxu1 %v1015_v6 }
 0x221   :  { %1143 = vmatpush1.bf16.msra.mxu0 %v2608_v42  ;;  %1184 = vmatpush1.bf16.msra.mxu1 %v2834_v11 }
 0x222   :  { %1010 = vst [vmem:[%s3443_s11] sm:$0xf] %v1009_v39  ;;  %1144 = vmatprep.subr.bf16.mxu0 %v2614_v43  ;;  %1185 = vmatprep.subr.bf16.mxu1 %v2839_v14 }
 0x223   :  { %1174 = vmatprep.mubr.bf16.mxu0 %v3465_v36  ;;  %1215 = vmatprep.mubr.bf16.mxu1 %v3465_v36 }
 0x225   :  { %1145 = vmatpush1.bf16.msra.mxu0 %v2620_v44  ;;  %1186 = vmatpush1.bf16.msra.mxu1 %v2845_v17 }
 0x226   :  { %1146 = vmatprep.subr.bf16.mxu0 %v2627_v45  ;;  %1187 = vmatprep.subr.bf16.mxu1 %v2852_v20 }
 0x229   :  { %1147 = vmatpush1.bf16.msra.mxu0 %v2633_v46  ;;  %1188 = vmatpush1.bf16.msra.mxu1 %v2858_v23 }
 0x22a   :  { %1148 = vmatprep.subr.bf16.mxu0 %v2639_v47  ;;  %1189 = vmatprep.subr.bf16.mxu1 %v2864_v25 }
 0x22d   :  { %1149 = vmatpush1.bf16.msra.mxu0 %v2645_v48  ;;  %1190 = vmatpush1.bf16.msra.mxu1 %v2870_v27 }
 0x22e   :  { %1150 = vmatprep.subr.bf16.mxu0 %v2651_v49  ;;  %1191 = vmatprep.subr.bf16.mxu1 %v2876_v29 }
 0x231   :  { %1151 = vmatpush1.bf16.msra.mxu0 %v2657_v50  ;;  %1192 = vmatpush1.bf16.msra.mxu1 %v2882_v35 }
 0x232   :  { %1152 = vmatprep.subr.bf16.mxu0 %v2663_v51  ;;  %1193 = vmatprep.subr.bf16.mxu1 %v2890_v57 }
 0x235   :  { %1153 = vmatpush1.bf16.msra.mxu0 %v2669_v52  ;;  %1194 = vmatpush1.bf16.msra.mxu1 %v2898_v19 }
 0x236   :  { %1154 = vmatprep.subr.bf16.mxu0 %v2675_v53  ;;  %1195 = vmatprep.subr.bf16.mxu1 %v2904_v21 }
 0x239   :  { %1155 = vmatpush1.bf16.msra.mxu0 %v2681_v54  ;;  %1196 = vmatpush1.bf16.msra.mxu1 %v2910_v0 }
 0x23a   :  { %1156 = vmatprep.subr.bf16.mxu0 %v2687_v55  ;;  %1197 = vmatprep.subr.bf16.mxu1 %v2916_v2 }
 0x23d   :  { %1157 = vmatpush1.bf16.msra.mxu0 %v2693_v56  ;;  %1198 = vmatpush1.bf16.msra.mxu1 %v2923_v5 }
 0x23e   :  { %1268 = vmatprep.subr.bf16.mxu0 %v2600_v40  ;;  %1309 = vmatprep.subr.bf16.mxu1 %v2783_v10 }
 0x2e0   :  { %v1050_v38 = vpop.f32.mrf.mxu0  ;;  %v1091_v41 = vpop.f32.mrf.mxu1 }
 0x2e1   :  { %v1098_v61 = vadd.f32 %v1050_v38, %v2800_v22  ;;  %v1100_v63 = vadd.f32 %v1091_v41, %v2940_v33 }
 0x2e2   :  { %v1052_v7 = vpop.f32.mrf.mxu0  ;;  %v1093_v8 = vpop.f32.mrf.mxu1 }
 0x2e3   :  { %v2000_v13 = vmul.f32 -1.442695, %v1098_v61  ;;  %v1099_v9 = vadd.f32 %v1052_v7, %v2802_v24  ;;  %v2002_v6 = vmul.f32 -1.442695, %v1100_v63  ;;  %v1101_v39 = vadd.f32 %v1093_v8, %v2944_v37  ;;  %v1131_v8 = vpop.permute.xlu0 %1130 }
 0x2e4   :  { %v1054_v60 = vpop.f32.mrf.mxu0  ;;  %v1095_v1 = vpop.f32.mrf.mxu1 }
 0x2e5   :  { %2232 = vpow2.f32 %v2000_v13  ;;  %v2001_v3 = vmul.f32 -1.442695, %v1099_v9 }
 0x2e6   :  { %v1055_v58 = vpop.f32.mrf.mxu0  ;;  %v1096_v59 = vpop.f32.mrf.mxu1 }
 0x2e7   :  { %2234 = vpow2.f32 %v2001_v3 }
 0x2e8   :  { %2236 = vpow2.f32 %v2002_v6 }
 0x2e9   :  { %2238 = vtanh.f32 %v1101_v39 }
 0x2f2   :  { %v2233_v16 = vpop.eup %2232 }
 0x2f3   :  { %v1111_v12 = vadd.f32 1.0, %v2233_v16 }
 0x2f4   :  { %v2235_v22 = vpop.eup %2234 }
 0x2f5   :  { %2240 = vrcp.f32 %v1111_v12  ;;  %v1112_v38 = vadd.f32 1.0, %v2235_v22  ;;  %v2237_v24 = vpop.eup %2236 }
 0x2f6   :  { %v2239_v61 = vpop.eup %2238  ;;  %v1113_v60 = vadd.f32 1.0, %v2237_v24 }
 0x2f7   :  { %2242 = vrcp.f32 %v1112_v38 }
 0x2f8   :  { %2244 = vrcp.f32 %v1113_v60 }
 0x302   :  { %v2241_v7 = vpop.eup %2240 }
 0x303   :  { %v1122_v13 = vmul.f32 %v2241_v7, %v2239_v61 }
 0x304   :  { %v2243_v9 = vpop.eup %2242 }
 0x305   :  { %v1121_v1 = vmul.f32 %v2243_v9, %v3016_v18  ;;  %v2245_v37 = vpop.eup %2244  ;;  %v2013_v18 = vld [vmem:[%s3437_s1 + $0x18] sm:$0xff] }
 0x306   :  { %1382 = vperm.xlu1 %2097, %v2013_v18  }
 0x307   :  { %v3064_v33 = vadd.f32 %v1122_v13, %v1121_v1 }
 0x309   :  { %2246 = vtanh.f32 %v3064_v33 }
 0x316   :  { %v2247_v41 = vpop.eup %2246 }
 0x317   :  { %v1125_v3 = vmul.f32 %v2247_v41, %v2245_v37 }
 0x319   :  { %v1133_v12 = vmul.f32 %v1131_v8, %v1125_v3  ;;  %v1141_v58 = vpack.c.bf16 %v1125_v3, %v1125_v3 }
 0x31b   :  { %v1134_v59 = vpack.c.bf16 %v1133_v12, %v1133_v12  ;;  %1175 = vmatmul.mubr.bf16.vlgmr.msra.gmra.mxu0 %v1141_v58  ;;  %1216 = vmatmul.mubr.bf16.vlgmr.msra.gmra.mxu1 %v1141_v58 }
 0x31c   :  { %1269 = vmatpush1.bf16.msra.mxu0 %v2608_v42  ;;  %1310 = vmatpush1.bf16.msra.mxu1 %v2834_v11 }
 0x31d   :  { %2004 = vst [vmem:[%s3443_s11 + $0x4] sm:$0xf] %v1134_v59  ;;  %1270 = vmatprep.subr.bf16.mxu0 %v2614_v43  ;;  %1311 = vmatprep.subr.bf16.mxu1 %v2839_v14 }
 0x31e   :  { %1300 = vmatprep.mubr.bf16.mxu0 %v3465_v36  ;;  %1341 = vmatprep.mubr.bf16.mxu1 %v3465_v36 }
 0x320   :  { %1271 = vmatpush1.bf16.msra.mxu0 %v2620_v44  ;;  %1312 = vmatpush1.bf16.msra.mxu1 %v2845_v17 }
 0x321   :  { %1272 = vmatprep.subr.bf16.mxu0 %v2627_v45  ;;  %1313 = vmatprep.subr.bf16.mxu1 %v2852_v20 }
 0x324   :  { %1273 = vmatpush1.bf16.msra.mxu0 %v2633_v46  ;;  %1314 = vmatpush1.bf16.msra.mxu1 %v2858_v23 }
 0x325   :  { %1274 = vmatprep.subr.bf16.mxu0 %v2639_v47  ;;  %1315 = vmatprep.subr.bf16.mxu1 %v2864_v25 }
 0x328   :  { %1275 = vmatpush1.bf16.msra.mxu0 %v2645_v48  ;;  %1316 = vmatpush1.bf16.msra.mxu1 %v2870_v27 }
 0x329   :  { %1276 = vmatprep.subr.bf16.mxu0 %v2651_v49  ;;  %1317 = vmatprep.subr.bf16.mxu1 %v2876_v29 }
 0x32c   :  { %1277 = vmatpush1.bf16.msra.mxu0 %v2657_v50  ;;  %1318 = vmatpush1.bf16.msra.mxu1 %v2882_v35 }
 0x32d   :  { %1278 = vmatprep.subr.bf16.mxu0 %v2663_v51  ;;  %1319 = vmatprep.subr.bf16.mxu1 %v2890_v57 }
 0x330   :  { %1279 = vmatpush1.bf16.msra.mxu0 %v2669_v52  ;;  %1320 = vmatpush1.bf16.msra.mxu1 %v2898_v19 }
 0x331   :  { %1280 = vmatprep.subr.bf16.mxu0 %v2675_v53  ;;  %1321 = vmatprep.subr.bf16.mxu1 %v2904_v21 }
 0x334   :  { %1281 = vmatpush1.bf16.msra.mxu0 %v2681_v54  ;;  %1322 = vmatpush1.bf16.msra.mxu1 %v2910_v0 }
 0x335   :  { %1282 = vmatprep.subr.bf16.mxu0 %v2687_v55  ;;  %1323 = vmatprep.subr.bf16.mxu1 %v2916_v2 }
 0x338   :  { %1283 = vmatpush1.bf16.msra.mxu0 %v2693_v56  ;;  %1324 = vmatpush1.bf16.msra.mxu1 %v2923_v5 }
 0x339   :  { %1394 = vmatprep.subr.bf16.mxu0 %v2600_v40  ;;  %1435 = vmatprep.subr.bf16.mxu1 %v2783_v10 }
 0x3db   :  { %v1176_v63 = vpop.f32.mrf.mxu0  ;;  %v1217_v6 = vpop.f32.mrf.mxu1 }
 0x3dc   :  { %v1224_v39 = vadd.f32 %v1176_v63, %v2804_v26  ;;  %v1226_v60 = vadd.f32 %v1217_v6, %v2950_v15 }
 0x3dd   :  { %v1178_v16 = vpop.f32.mrf.mxu0  ;;  %v1219_v22 = vpop.f32.mrf.mxu1 }
 0x3de   :  { %v2005_v38 = vmul.f32 -1.442695, %v1224_v39  ;;  %v1225_v24 = vadd.f32 %v1178_v16, %v2806_v28  ;;  %v2007_v1 = vmul.f32 -1.442695, %v1226_v60  ;;  %v1227_v37 = vadd.f32 %v1219_v22, %v2953_v62  ;;  %v1257_v16 = vpop.permute.xlu1 %1256 }
 0x3df   :  { %v1180_v61 = vpop.f32.mrf.mxu0  ;;  %v1221_v7 = vpop.f32.mrf.mxu1 }
 0x3e0   :  { %2248 = vpow2.f32 %v2005_v38  ;;  %v2006_v40 = vmul.f32 -1.442695, %v1225_v24 }
 0x3e1   :  { %v1181_v13 = vpop.f32.mrf.mxu0  ;;  %v1222_v9 = vpop.f32.mrf.mxu1 }
 0x3e2   :  { %2250 = vpow2.f32 %v2006_v40 }
 0x3e3   :  { %2252 = vpow2.f32 %v2007_v1 }
 0x3e4   :  { %2254 = vtanh.f32 %v1227_v37 }
 0x3ed   :  { %v2249_v41 = vpop.eup %2248 }
 0x3ee   :  { %v1237_v8 = vadd.f32 1.0, %v2249_v41 }
 0x3ef   :  { %v2251_v26 = vpop.eup %2250 }
 0x3f0   :  { %2256 = vrcp.f32 %v1237_v8  ;;  %v1238_v3 = vadd.f32 1.0, %v2251_v26  ;;  %v2253_v28 = vpop.eup %2252 }
 0x3f1   :  { %v2255_v12 = vpop.eup %2254  ;;  %v1239_v63 = vadd.f32 1.0, %v2253_v28  ;;  %v1383_v28 = vpop.permute.xlu1 %1382 }
 0x3f2   :  { %2258 = vrcp.f32 %v1238_v3 }
 0x3f3   :  { %2260 = vrcp.f32 %v1239_v63  ;;  %v3171_v63 = vld [vmem:[%s3434_s3 + $0xe0] ss:$16 sps:$4 sm:$0xff]  }
 0x3fd   :  { %v2257_v58 = vpop.eup %2256 }
 0x3fe   :  { %v1248_v59 = vmul.f32 %v2257_v58, %v2255_v12 }
 0x3ff   :  { %v2259_v18 = vpop.eup %2258 }
 0x400   :  { %v1247_v39 = vmul.f32 %v2259_v18, %v3064_v33  ;;  %v2261_v62 = vpop.eup %2260 }
 0x402   :  { %v3112_v15 = vadd.f32 %v1248_v59, %v1247_v39  ;;  %v3181_v39 = vld [vmem:[%s3434_s3 + $0xc4] ss:$16 sps:$4 sm:$0xff]  }
 0x404   :  { %2262 = vtanh.f32 %v3112_v15 }
 0x411   :  { %v2263_v6 = vpop.eup %2262 }
 0x412   :  { %v1251_v22 = vmul.f32 %v2263_v6, %v2261_v62  ;;  %v3197_v62 = vld [vmem:[%s3434_s3 + $0xa4] ss:$16 sps:$4 sm:$0xff]   ;;  %v3204_v6 = vld [vmem:[%s3434_s3 + $0xa0] ss:$16 sps:$4 sm:$0xff]  }
 0x414   :  { %v1259_v38 = vmul.f32 %v1257_v16, %v1251_v22  ;;  %v1267_v24 = vpack.c.bf16 %v1251_v22, %v1251_v22  ;;  %v3211_v16 = vld [vmem:[%s3434_s3 + $0x84] ss:$16 sps:$4 sm:$0xff]   ;;  %v3218_v22 = vld [vmem:[%s3434_s3 + $0x80] ss:$16 sps:$4 sm:$0xff]  }
 0x416   :  { %v1260_v61 = vpack.c.bf16 %v1259_v38, %v1259_v38  ;;  %1301 = vmatmul.mubr.bf16.vlgmr.msra.gmra.mxu0 %v1267_v24  ;;  %1342 = vmatmul.mubr.bf16.vlgmr.msra.gmra.mxu1 %v1267_v24  ;;  %v3225_v38 = vld [vmem:[%s3434_s3 + $0x64] ss:$16 sps:$4 sm:$0xff]   ;;  %v3232_v24 = vld [vmem:[%s3434_s3 + $0x60] ss:$16 sps:$4 sm:$0xff]  }
 0x417   :  { %1395 = vmatpush1.bf16.msra.mxu0 %v2608_v42  ;;  %1436 = vmatpush1.bf16.msra.mxu1 %v2834_v11  ;;  %v3153_v42 = vld [vmem:[%s3434_s3 + $0xe4] ss:$16 sps:$4 sm:$0xff]  }
 0x418   :  { %2009 = vst [vmem:[%s3443_s11 + $0x8] sm:$0xf] %v1260_v61  ;;  %1396 = vmatprep.subr.bf16.mxu0 %v2614_v43  ;;  %1437 = vmatprep.subr.bf16.mxu1 %v2839_v14  ;;  %v2018_v43 = vld [vmem:[%s3437_s1 + $0x20] sm:$0xff] }
 0x419   :  { %1426 = vmatprep.mubr.bf16.mxu0 %v3465_v36  ;;  %1467 = vmatprep.mubr.bf16.mxu1 %v3465_v36  ;;  %v3239_v61 = vld [vmem:[%s3434_s3 + $0x44] ss:$16 sps:$4 sm:$0xff]  }
 0x41a   :  { %1508 = vperm.xlu0 %2096, %v2018_v43   ;;  %v3246_v43 = vld [vmem:[%s3434_s3 + $0x40] ss:$16 sps:$4 sm:$0xff]  }
 0x41b   :  { %1397 = vmatpush1.bf16.msra.mxu0 %v2620_v44  ;;  %1438 = vmatpush1.bf16.msra.mxu1 %v2845_v17 }
 0x41c   :  { %1398 = vmatprep.subr.bf16.mxu0 %v2627_v45  ;;  %1439 = vmatprep.subr.bf16.mxu1 %v2852_v20 }
 0x41f   :  { %1399 = vmatpush1.bf16.msra.mxu0 %v2633_v46  ;;  %1440 = vmatpush1.bf16.msra.mxu1 %v2858_v23 }
 0x420   :  { %1400 = vmatprep.subr.bf16.mxu0 %v2639_v47  ;;  %1441 = vmatprep.subr.bf16.mxu1 %v2864_v25 }
 0x423   :  { %1401 = vmatpush1.bf16.msra.mxu0 %v2645_v48  ;;  %1442 = vmatpush1.bf16.msra.mxu1 %v2870_v27 }
 0x424   :  { %1402 = vmatprep.subr.bf16.mxu0 %v2651_v49  ;;  %1443 = vmatprep.subr.bf16.mxu1 %v2876_v29 }
 0x427   :  { %1403 = vmatpush1.bf16.msra.mxu0 %v2657_v50  ;;  %1444 = vmatpush1.bf16.msra.mxu1 %v2882_v35 }
 0x428   :  { %1404 = vmatprep.subr.bf16.mxu0 %v2663_v51  ;;  %1445 = vmatprep.subr.bf16.mxu1 %v2890_v57 }
 0x42b   :  { %1405 = vmatpush1.bf16.msra.mxu0 %v2669_v52  ;;  %1446 = vmatpush1.bf16.msra.mxu1 %v2898_v19 }
 0x42c   :  { %1406 = vmatprep.subr.bf16.mxu0 %v2675_v53  ;;  %1447 = vmatprep.subr.bf16.mxu1 %v2904_v21 }
 0x42f   :  { %1407 = vmatpush1.bf16.msra.mxu0 %v2681_v54  ;;  %1448 = vmatpush1.bf16.msra.mxu1 %v2910_v0 }
 0x430   :  { %1408 = vmatprep.subr.bf16.mxu0 %v2687_v55  ;;  %1449 = vmatprep.subr.bf16.mxu1 %v2916_v2 }
 0x433   :  { %1409 = vmatpush1.bf16.msra.mxu0 %v2693_v56  ;;  %1450 = vmatpush1.bf16.msra.mxu1 %v2923_v5 }
 0x434   :  { %1520 = vmatprep.subr.bf16.mxu0 %v3153_v42  ;;  %1561 = vmatprep.subr.bf16.mxu1 %v2783_v10 }
 0x4d6   :  { %v1302_v44 = vpop.f32.mrf.mxu0  ;;  %v1343_v45 = vpop.f32.mrf.mxu1 }
 0x4d7   :  { %v1350_v46 = vadd.f32 %v1302_v44, %v2808_v30  ;;  %v1352_v56 = vadd.f32 %v1343_v45, %v2958_v4  ;;  %v3253_v44 = vld [vmem:[%s3434_s3 + $0x24] ss:$16 sps:$4 sm:$0xff]   ;;  %v3260_v45 = vld [vmem:[%s3434_s3 + $0x20] ss:$16 sps:$4 sm:$0xff]  }
 0x4d8   :  { %v1304_v47 = vpop.f32.mrf.mxu0  ;;  %v1345_v48 = vpop.f32.mrf.mxu1 }
 0x4d9   :  { %v2010_v49 = vmul.f32 -1.442695, %v1350_v46  ;;  %v1351_v50 = vadd.f32 %v1304_v47, %v2810_v32  ;;  %v2012_v33 = vmul.f32 -1.442695, %v1352_v56  ;;  %v1353_v7 = vadd.f32 %v1345_v48, %v2961_v31  ;;  %v3267_v46 = vld [vmem:[%s3434_s3 + $0x4] ss:$16 sps:$4 sm:$0xff]  }
 0x4da   :  { %v1306_v51 = vpop.f32.mrf.mxu0  ;;  %v1347_v52 = vpop.f32.mrf.mxu1  ;;  %v3274_v47 = vld [vmem:[%s3434_s3] ss:$16 sps:$4 sm:$0xff]   ;;  %v2023_v48 = vld [vmem:[%s3437_s1 + $0x28] sm:$0xff] }
 0x4db   :  { %2264 = vpow2.f32 %v2010_v49  ;;  %v2011_v53 = vmul.f32 -1.442695, %v1351_v50  ;;  %1634 = vperm.xlu1 %2097, %v2023_v48  }
 0x4dc   :  { %v1307_v54 = vpop.f32.mrf.mxu0  ;;  %v1348_v55 = vpop.f32.mrf.mxu1 }
 0x4dd   :  { %2266 = vpow2.f32 %v2011_v53  ;;  %v3466_v55 = vld [vmem:[#allocation3_spill] sm:$0xff] }
 0x4de   :  { %2268 = vpow2.f32 %v2012_v33 }
 0x4df   :  { %2270 = vtanh.f32 %v1353_v7 }
 0x4e8   :  { %v2265_v40 = vpop.eup %2264 }
 0x4e9   :  { %v1363_v13 = vadd.f32 1.0, %v2265_v40 }
 0x4ea   :  { %v2267_v30 = vpop.eup %2266 }
 0x4eb   :  { %2272 = vrcp.f32 %v1363_v13  ;;  %v1364_v9 = vadd.f32 1.0, %v2267_v30  ;;  %v2269_v32 = vpop.eup %2268  ;;  %v3467_v30 = vld [vmem:[#allocation11_spill] sm:$0xff] }
 0x4ec   :  { %v2271_v60 = vpop.eup %2270  ;;  %v1365_v8 = vadd.f32 1.0, %v2269_v32 }
 0x4ed   :  { %2274 = vrcp.f32 %v1364_v9 }
 0x4ee   :  { %2276 = vrcp.f32 %v1365_v8 }
 0x4f8   :  { %v2273_v1 = vpop.eup %2272 }
 0x4f9   :  { %v1374_v37 = vmul.f32 %v2273_v1, %v2271_v60  ;;  %v3468_v60 = vld [vmem:[#allocation12_spill] sm:$0xff] }
 0x4fa   :  { %v2275_v41 = vpop.eup %2274 }
 0x4fb   :  { %v1373_v26 = vmul.f32 %v2275_v41, %v3112_v15  ;;  %v2277_v31 = vpop.eup %2276  ;;  %v3190_v15 = vld [vmem:[%s3434_s3 + $0xc0] ss:$16 sps:$4 sm:$0xff]  }
 0x4fd   :  { %v3165_v4 = vadd.f32 %v1374_v37, %v1373_v26 }
 0x4ff   :  { %2278 = vtanh.f32 %v3165_v4 }
 0x50c   :  { %v2279_v3 = vpop.eup %2278 }
 0x50d   :  { %v1377_v12 = vmul.f32 %v2279_v3, %v2277_v31 }
 0x50f   :  { %v1385_v58 = vmul.f32 %v1383_v28, %v1377_v12  ;;  %v1393_v59 = vpack.c.bf16 %v1377_v12, %v1377_v12 }
 0x511   :  { %v1386_v18 = vpack.c.bf16 %v1385_v58, %v1385_v58  ;;  %1427 = vmatmul.mubr.bf16.vlgmr.msra.gmra.mxu0 %v1393_v59  ;;  %1468 = vmatmul.mubr.bf16.vlgmr.msra.gmra.mxu1 %v1393_v59 }
 0x512   :  { %1521 = vmatpush1.bf16.msra.mxu0 %v3171_v63  ;;  %1562 = vmatpush1.bf16.msra.mxu1 %v2834_v11 }
 0x513   :  { %2014 = vst [vmem:[%s3443_s11 + $0xc] sm:$0xf] %v1386_v18  ;;  %1522 = vmatprep.subr.bf16.mxu0 %v3181_v39  ;;  %1563 = vmatprep.subr.bf16.mxu1 %v2839_v14 }
 0x514   :  { %1552 = vmatprep.mubr.bf16.mxu0 %v3465_v36  ;;  %1593 = vmatprep.mubr.bf16.mxu1 %v3465_v36 }
 0x516   :  { %1523 = vmatpush1.bf16.msra.mxu0 %v3190_v15  ;;  %1564 = vmatpush1.bf16.msra.mxu1 %v2845_v17 }
 0x517   :  { %1524 = vmatprep.subr.bf16.mxu0 %v3197_v62  ;;  %1565 = vmatprep.subr.bf16.mxu1 %v2852_v20 }
 0x51a   :  { %1525 = vmatpush1.bf16.msra.mxu0 %v3204_v6  ;;  %1566 = vmatpush1.bf16.msra.mxu1 %v2858_v23 }
 0x51b   :  { %1526 = vmatprep.subr.bf16.mxu0 %v3211_v16  ;;  %1567 = vmatprep.subr.bf16.mxu1 %v2864_v25 }
 0x51e   :  { %1527 = vmatpush1.bf16.msra.mxu0 %v3218_v22  ;;  %1568 = vmatpush1.bf16.msra.mxu1 %v2870_v27 }
 0x51f   :  { %1528 = vmatprep.subr.bf16.mxu0 %v3225_v38  ;;  %1569 = vmatprep.subr.bf16.mxu1 %v2876_v29 }
 0x522   :  { %1529 = vmatpush1.bf16.msra.mxu0 %v3232_v24  ;;  %1570 = vmatpush1.bf16.msra.mxu1 %v2882_v35 }
 0x523   :  { %1530 = vmatprep.subr.bf16.mxu0 %v3239_v61  ;;  %1571 = vmatprep.subr.bf16.mxu1 %v2890_v57 }
 0x526   :  { %1531 = vmatpush1.bf16.msra.mxu0 %v3246_v43  ;;  %1572 = vmatpush1.bf16.msra.mxu1 %v2898_v19 }
 0x527   :  { %1532 = vmatprep.subr.bf16.mxu0 %v3253_v44  ;;  %1573 = vmatprep.subr.bf16.mxu1 %v2904_v21 }
 0x52a   :  { %1533 = vmatpush1.bf16.msra.mxu0 %v3260_v45  ;;  %1574 = vmatpush1.bf16.msra.mxu1 %v2910_v0 }
 0x52b   :  { %1534 = vmatprep.subr.bf16.mxu0 %v3267_v46  ;;  %1575 = vmatprep.subr.bf16.mxu1 %v2916_v2 }
 0x52e   :  { %1535 = vmatpush1.bf16.msra.mxu0 %v3274_v47  ;;  %1576 = vmatpush1.bf16.msra.mxu1 %v2923_v5 }
 0x52f   :  { %1646 = vmatprep.subr.bf16.mxu0 %v3153_v42  ;;  %1687 = vmatprep.subr.bf16.mxu1 %v2783_v10 }
 0x5d1   :  { %v1428_v49 = vpop.f32.mrf.mxu0  ;;  %v1469_v50 = vpop.f32.mrf.mxu1 }
 0x5d2   :  { %v1476_v51 = vadd.f32 %v1428_v49, %v2812_v34  ;;  %v1478_v9 = vadd.f32 %v1469_v50, %v3467_v30  ;;  %v1509_v50 = vpop.permute.xlu0 %1508 }
 0x5d3   :  { %v1430_v52 = vpop.f32.mrf.mxu0  ;;  %v1471_v53 = vpop.f32.mrf.mxu1 }
 0x5d4   :  { %v2015_v54 = vmul.f32 -1.442695, %v1476_v51  ;;  %v1477_v56 = vadd.f32 %v1430_v52, %v3466_v55  ;;  %v2017_v32 = vmul.f32 -1.442695, %v1478_v9  ;;  %v1479_v1 = vadd.f32 %v1471_v53, %v3468_v60 }
 0x5d5   :  { %v1432_v33 = vpop.f32.mrf.mxu0  ;;  %v1473_v7 = vpop.f32.mrf.mxu1 }
 0x5d6   :  { %2280 = vpow2.f32 %v2015_v54  ;;  %v2016_v40 = vmul.f32 -1.442695, %v1477_v56  ;;  %v3472_v33 = vld [vmem:[#allocation14_spill] sm:$0xff] }
 0x5d7   :  { %v1433_v13 = vpop.f32.mrf.mxu0  ;;  %v1474_v10 = vpop.f32.mrf.mxu1 }
 0x5d8   :  { %2282 = vpow2.f32 %v2016_v40 }
 0x5d9   :  { %2284 = vpow2.f32 %v2017_v32 }
 0x5da   :  { %2286 = vtanh.f32 %v1479_v1 }
 0x5e3   :  { %v2281_v37 = vpop.eup %2280 }
 0x5e4   :  { %v1489_v41 = vadd.f32 1.0, %v2281_v37 }
 0x5e5   :  { %v2283_v34 = vpop.eup %2282 }
 0x5e6   :  { %2288 = vrcp.f32 %v1489_v41  ;;  %v1490_v8 = vadd.f32 1.0, %v2283_v34  ;;  %v2285_v26 = vpop.eup %2284 }
 0x5e7   :  { %v2287_v31 = vpop.eup %2286  ;;  %v1491_v58 = vadd.f32 1.0, %v2285_v26 }
 0x5e8   :  { %2290 = vrcp.f32 %v1490_v8 }
 0x5e9   :  { %2292 = vrcp.f32 %v1491_v58 }
 0x5f3   :  { %v2289_v3 = vpop.eup %2288 }
 0x5f4   :  { %v1500_v28 = vmul.f32 %v2289_v3, %v2287_v31  ;;  %v1635_v3 = vpop.permute.xlu1 %1634 }
 0x5f5   :  { %v2291_v12 = vpop.eup %2290 }
 0x5f6   :  { %v1499_v59 = vmul.f32 %v2291_v12, %v3165_v4  ;;  %v2293_v48 = vpop.eup %2292  ;;  %v3471_v4 = vld [vmem:[#allocation13_spill] sm:$0xff] }
 0x5f8   :  { %v3288_v18 = vadd.f32 %v1500_v28, %v1499_v59 }
 0x5fa   :  { %2294 = vtanh.f32 %v3288_v18 }
 0x607   :  { %v2295_v49 = vpop.eup %2294 }
 0x608   :  { %v1503_v51 = vmul.f32 %v2295_v49, %v2293_v48  ;;  %v2362_v48 = vld [vmem:[%s3434_s3 + $0xcc] ss:$16 sps:$4 sm:$0xff]  }
 0x60a   :  { %v1511_v52 = vmul.f32 %v1509_v50, %v1503_v51  ;;  %v1519_v53 = vpack.c.bf16 %v1503_v51, %v1503_v51 }
 0x60c   :  { %v1512_v54 = vpack.c.bf16 %v1511_v52, %v1511_v52  ;;  %1553 = vmatmul.mubr.bf16.vlgmr.msra.gmra.mxu0 %v1519_v53  ;;  %1594 = vmatmul.mubr.bf16.vlgmr.msra.gmra.mxu1 %v1519_v53 }
 0x60d   :  { %1647 = vmatpush1.bf16.msra.mxu0 %v3171_v63  ;;  %1688 = vmatpush1.bf16.msra.mxu1 %v2834_v11  ;;  %v2360_v11 = vld [vmem:[%s3434_s3 + $0xec] ss:$16 sps:$4 sm:$0xff]  }
 0x60e   :  { %2019 = vst [vmem:[%s3443_s11 + $0x10] sm:$0xf] %v1512_v54  ;;  %1648 = vmatprep.subr.bf16.mxu0 %v3181_v39  ;;  %1689 = vmatprep.subr.bf16.mxu1 %v2839_v14  ;;  %v2028_v14 = vld [vmem:[%s3437_s1 + $0x30] sm:$0xff] }
 0x60f   :  { %1678 = vmatprep.mubr.bf16.mxu0 %v3465_v36  ;;  %1719 = vmatprep.mubr.bf16.mxu1 %v3465_v36 }
 0x610   :  { %1760 = vperm.xlu0 %2096, %v2028_v14  }
 0x611   :  { %1649 = vmatpush1.bf16.msra.mxu0 %v3190_v15  ;;  %1690 = vmatpush1.bf16.msra.mxu1 %v2845_v17 }
 0x612   :  { %1650 = vmatprep.subr.bf16.mxu0 %v3197_v62  ;;  %1691 = vmatprep.subr.bf16.mxu1 %v2852_v20 }
 0x615   :  { %1651 = vmatpush1.bf16.msra.mxu0 %v3204_v6  ;;  %1692 = vmatpush1.bf16.msra.mxu1 %v2858_v23  ;;  %v3469_v23 = vld [vmem:[#allocation4_spill] sm:$0xff] }
 0x616   :  { %1652 = vmatprep.subr.bf16.mxu0 %v3211_v16  ;;  %1693 = vmatprep.subr.bf16.mxu1 %v2864_v25 }
 0x619   :  { %1653 = vmatpush1.bf16.msra.mxu0 %v3218_v22  ;;  %1694 = vmatpush1.bf16.msra.mxu1 %v2870_v27 }
 0x61a   :  { %1654 = vmatprep.subr.bf16.mxu0 %v3225_v38  ;;  %1695 = vmatprep.subr.bf16.mxu1 %v2876_v29 }
 0x61d   :  { %1655 = vmatpush1.bf16.msra.mxu0 %v3232_v24  ;;  %1696 = vmatpush1.bf16.msra.mxu1 %v2882_v35 }
 0x61e   :  { %1656 = vmatprep.subr.bf16.mxu0 %v3239_v61  ;;  %1697 = vmatprep.subr.bf16.mxu1 %v2890_v57  ;;  %v3470_v57 = vld [vmem:[#allocation5_spill] sm:$0xff] }
 0x621   :  { %1657 = vmatpush1.bf16.msra.mxu0 %v3246_v43  ;;  %1698 = vmatpush1.bf16.msra.mxu1 %v2898_v19 }
 0x622   :  { %1658 = vmatprep.subr.bf16.mxu0 %v3253_v44  ;;  %1699 = vmatprep.subr.bf16.mxu1 %v2904_v21 }
 0x625   :  { %1659 = vmatpush1.bf16.msra.mxu0 %v3260_v45  ;;  %1700 = vmatpush1.bf16.msra.mxu1 %v2910_v0 }
 0x626   :  { %1660 = vmatprep.subr.bf16.mxu0 %v3267_v46  ;;  %1701 = vmatprep.subr.bf16.mxu1 %v2916_v2 }
 0x629   :  { %1661 = vmatpush1.bf16.msra.mxu0 %v3274_v47  ;;  %1702 = vmatpush1.bf16.msra.mxu1 %v2923_v5 }
 0x62a   :  { %1772 = vmatprep.subr.bf16.mxu0 %v3153_v42  ;;  %1813 = vmatprep.subr.bf16.mxu1 %v2360_v11  ;;  %v3474_v11 = vld [vmem:[#allocation7_spill] sm:$0xff] }
 0x6cc   :  { %v1554_v17 = vpop.f32.mrf.mxu0  ;;  %v1595_v20 = vpop.f32.mrf.mxu1 }
 0x6cd   :  { %v1602_v25 = vadd.f32 %v1554_v17, %v3469_v23  ;;  %v1604_v55 = vadd.f32 %v1595_v20, %v3471_v4 }
 0x6ce   :  { %v1556_v27 = vpop.f32.mrf.mxu0  ;;  %v1597_v29 = vpop.f32.mrf.mxu1 }
 0x6cf   :  { %v2020_v35 = vmul.f32 -1.442695, %v1602_v25  ;;  %v1603_v19 = vadd.f32 %v1556_v27, %v3470_v57  ;;  %v2022_v56 = vmul.f32 -1.442695, %v1604_v55  ;;  %v1605_v7 = vadd.f32 %v1597_v29, %v3472_v33  ;;  %v3475_v27 = vld [vmem:[#allocation15_spill] sm:$0xff]  ;;  %v3476_v57 = vld [vmem:[#allocation16_spill] sm:$0xff] }
 0x6d0   :  { %v1558_v21 = vpop.f32.mrf.mxu0  ;;  %v1599_v0 = vpop.f32.mrf.mxu1 }
 0x6d1   :  { %2296 = vpow2.f32 %v2020_v35  ;;  %v2021_v2 = vmul.f32 -1.442695, %v1603_v19 }
 0x6d2   :  { %v1559_v5 = vpop.f32.mrf.mxu0  ;;  %v1600_v42 = vpop.f32.mrf.mxu1 }
 0x6d3   :  { %2298 = vpow2.f32 %v2021_v2 }
 0x6d4   :  { %2300 = vpow2.f32 %v2022_v56 }
 0x6d5   :  { %2302 = vtanh.f32 %v1605_v7 }
 0x6de   :  { %v2297_v40 = vpop.eup %2296 }
 0x6df   :  { %v1615_v13 = vadd.f32 1.0, %v2297_v40 }
 0x6e0   :  { %v2299_v10 = vpop.eup %2298 }
 0x6e1   :  { %2304 = vrcp.f32 %v1615_v13  ;;  %v1616_v30 = vadd.f32 1.0, %v2299_v10  ;;  %v2301_v9 = vpop.eup %2300 }
 0x6e2   :  { %v2303_v32 = vpop.eup %2302  ;;  %v1617_v41 = vadd.f32 1.0, %v2301_v9  ;;  %v1761_v9 = vpop.permute.xlu0 %1760 }
 0x6e3   :  { %2306 = vrcp.f32 %v1616_v30 }
 0x6e4   :  { %2308 = vrcp.f32 %v1617_v41 }
 0x6ee   :  { %v2305_v60 = vpop.eup %2304 }
 0x6ef   :  { %v1626_v1 = vmul.f32 %v2305_v60, %v2303_v32 }
 0x6f0   :  { %v2307_v37 = vpop.eup %2306 }
 0x6f1   :  { %v1625_v34 = vmul.f32 %v2307_v37, %v3288_v18  ;;  %v2309_v26 = vpop.eup %2308  ;;  %v2361_v18 = vld [vmem:[%s3434_s3 + $0xe8] ss:$16 sps:$4 sm:$0xff]  }
 0x6f3   :  { %v3338_v8 = vadd.f32 %v1626_v1, %v1625_v34 }
 0x6f5   :  { %2310 = vtanh.f32 %v3338_v8 }
 0x702   :  { %v2311_v31 = vpop.eup %2310 }
 0x703   :  { %v1629_v28 = vmul.f32 %v2311_v31, %v2309_v26  ;;  %v3477_v26 = vld [vmem:[#allocation8_spill] sm:$0xff] }
 0x705   :  { %v1637_v12 = vmul.f32 %v1635_v3, %v1629_v28  ;;  %v1645_v58 = vpack.c.bf16 %v1629_v28, %v1629_v28 }
 0x707   :  { %v1638_v59 = vpack.c.bf16 %v1637_v12, %v1637_v12  ;;  %1679 = vmatmul.mubr.bf16.vlgmr.msra.gmra.mxu0 %v1645_v58  ;;  %1720 = vmatmul.mubr.bf16.vlgmr.msra.gmra.mxu1 %v1645_v58  ;;  %v3478_v12 = vld [vmem:[#allocation9_spill] sm:$0xff] }
 0x708   :  { %1773 = vmatpush1.bf16.msra.mxu0 %v3171_v63  ;;  %1814 = vmatpush1.bf16.msra.mxu1 %v2361_v18  ;;  %v2363_v63 = vld [vmem:[%s3434_s3 + $0xc8] ss:$16 sps:$4 sm:$0xff]  }
 0x709   :  { %2024 = vst [vmem:[%s3443_s11 + $0x14] sm:$0xf] %v1638_v59  ;;  %1774 = vmatprep.subr.bf16.mxu0 %v3181_v39  ;;  %1815 = vmatprep.subr.bf16.mxu1 %v2362_v48  ;;  %v2364_v39 = vld [vmem:[%s3434_s3 + $0xac] ss:$16 sps:$4 sm:$0xff]  }
 0x70a   :  { %1804 = vmatprep.mubr.bf16.mxu0 %v3465_v36  ;;  %1845 = vmatprep.mubr.bf16.mxu1 %v3465_v36  ;;  %v2365_v36 = vld [vmem:[%s3434_s3 + $0xa8] ss:$16 sps:$4 sm:$0xff]  }
 0x70c   :  { %1775 = vmatpush1.bf16.msra.mxu0 %v3190_v15  ;;  %1816 = vmatpush1.bf16.msra.mxu1 %v2363_v63  ;;  %v2366_v15 = vld [vmem:[%s3434_s3 + $0x8c] ss:$16 sps:$4 sm:$0xff]  }
 0x70d   :  { %1776 = vmatprep.subr.bf16.mxu0 %v3197_v62  ;;  %1817 = vmatprep.subr.bf16.mxu1 %v2364_v39  ;;  %v2367_v62 = vld [vmem:[%s3434_s3 + $0x88] ss:$16 sps:$4 sm:$0xff]  }
 0x710   :  { %1777 = vmatpush1.bf16.msra.mxu0 %v3204_v6  ;;  %1818 = vmatpush1.bf16.msra.mxu1 %v2365_v36  ;;  %v2368_v6 = vld [vmem:[%s3434_s3 + $0x6c] ss:$16 sps:$4 sm:$0xff]   ;;  %v3479_v36 = vld [vmem:[#allocation17_spill] sm:$0xff] }
 0x711   :  { %1778 = vmatprep.subr.bf16.mxu0 %v3211_v16  ;;  %1819 = vmatprep.subr.bf16.mxu1 %v2366_v15  ;;  %v2369_v16 = vld [vmem:[%s3434_s3 + $0x68] ss:$16 sps:$4 sm:$0xff]  }
 0x714   :  { %1779 = vmatpush1.bf16.msra.mxu0 %v3218_v22  ;;  %1820 = vmatpush1.bf16.msra.mxu1 %v2367_v62  ;;  %v2370_v22 = vld [vmem:[%s3434_s3 + $0x4c] ss:$16 sps:$4 sm:$0xff]  }
 0x715   :  { %1780 = vmatprep.subr.bf16.mxu0 %v3225_v38  ;;  %1821 = vmatprep.subr.bf16.mxu1 %v2368_v6  ;;  %v2371_v38 = vld [vmem:[%s3434_s3 + $0x48] ss:$16 sps:$4 sm:$0xff]  }
 0x716   :  { %v3480_v62 = vld [vmem:[#allocation10_spill] sm:$0xff] }
 0x717   :  { %v3481_v6 = vld [vmem:[#allocation18_spill] sm:$0xff] }
 0x718   :  { %1781 = vmatpush1.bf16.msra.mxu0 %v3232_v24  ;;  %1822 = vmatpush1.bf16.msra.mxu1 %v2369_v16  ;;  %v2372_v24 = vld [vmem:[%s3434_s3 + $0x2c] ss:$16 sps:$4 sm:$0xff]   ;;  %v433_v16 = vadd.f32 %v3481_v6, %v3480_v62 }
 0x719   :  { %1782 = vmatprep.subr.bf16.mxu0 %v3239_v61  ;;  %1823 = vmatprep.subr.bf16.mxu1 %v2370_v22  ;;  %v2373_v61 = vld [vmem:[%s3434_s3 + $0x28] ss:$16 sps:$4 sm:$0xff]  }
 0x71c   :  { %1783 = vmatpush1.bf16.msra.mxu0 %v3246_v43  ;;  %1824 = vmatpush1.bf16.msra.mxu1 %v2371_v38  ;;  %v2374_v43 = vld [vmem:[%s3434_s3 + $0xc] ss:$16 sps:$4 sm:$0xff]  }
 0x71d   :  { %1784 = vmatprep.subr.bf16.mxu0 %v3253_v44  ;;  %1825 = vmatprep.subr.bf16.mxu1 %v2372_v24  ;;  %v2375_v44 = vld [vmem:[%s3434_s3 + $0x8] ss:$16 sps:$4 sm:$0xff]  }
 0x720   :  { %1785 = vmatpush1.bf16.msra.mxu0 %v3260_v45  ;;  %1826 = vmatpush1.bf16.msra.mxu1 %v2373_v61  ;;  %v2033_v45 = vld [vmem:[%s3437_s1 + $0x38] sm:$0xff] }
 0x721   :  { %1786 = vmatprep.subr.bf16.mxu0 %v3267_v46  ;;  %1827 = vmatprep.subr.bf16.mxu1 %v2374_v43  ;;  %v3473_v46 = vld [vmem:[#allocation6_spill] sm:$0xff] }
 0x722   :  { %1886 = vperm.xlu1 %2097, %v2033_v45  }
 0x724   :  { %1787 = vmatpush1.bf16.msra.mxu0 %v3274_v47  ;;  %1828 = vmatpush1.bf16.msra.mxu1 %v2375_v44 }
 0x7c7   :  { %v1680_v49 = vpop.f32.mrf.mxu0  ;;  %v1721_v50 = vpop.f32.mrf.mxu1 }
 0x7c8   :  { %v1728_v51 = vadd.f32 %v1680_v49, %v3473_v46  ;;  %v1730_v29 = vadd.f32 %v1721_v50, %v3475_v27 }
 0x7c9   :  { %v1682_v52 = vpop.f32.mrf.mxu0  ;;  %v1723_v53 = vpop.f32.mrf.mxu1 }
 0x7ca   :  { %v2025_v54 = vmul.f32 -1.442695, %v1728_v51  ;;  %v1729_v14 = vadd.f32 %v1682_v52, %v3474_v11  ;;  %v2027_v35 = vmul.f32 -1.442695, %v1730_v29  ;;  %v1731_v19 = vadd.f32 %v1723_v53, %v3476_v57 }
 0x7cb   :  { %v1684_v47 = vpop.f32.mrf.mxu0  ;;  %v1725_v17 = vpop.f32.mrf.mxu1 }
 0x7cc   :  { %2312 = vpow2.f32 %v2025_v54  ;;  %v2026_v20 = vmul.f32 -1.442695, %v1729_v14  ;;  %v1887_v17 = vpop.permute.xlu1 %1886 }
 0x7cd   :  { %v1685_v23 = vpop.f32.mrf.mxu0  ;;  %v1726_v25 = vpop.f32.mrf.mxu1 }
 0x7ce   :  { %2314 = vpow2.f32 %v2026_v20 }
 0x7cf   :  { %2316 = vpow2.f32 %v2027_v35 }
 0x7d0   :  { %2318 = vtanh.f32 %v1731_v19 }
 0x7d9   :  { %v2313_v21 = vpop.eup %2312 }
 0x7da   :  { %v1741_v0 = vadd.f32 1.0, %v2313_v21 }
 0x7db   :  { %v2315_v2 = vpop.eup %2314 }
 0x7dc   :  { %2320 = vrcp.f32 %v1741_v0  ;;  %v1742_v5 = vadd.f32 1.0, %v2315_v2  ;;  %v2317_v42 = vpop.eup %2316 }
 0x7dd   :  { %v2319_v4 = vpop.eup %2318  ;;  %v1743_v7 = vadd.f32 1.0, %v2317_v42 }
 0x7de   :  { %2322 = vrcp.f32 %v1742_v5 }
 0x7df   :  { %2324 = vrcp.f32 %v1743_v7 }
 0x7e9   :  { %v2321_v55 = vpop.eup %2320 }
 0x7ea   :  { %v1752_v56 = vmul.f32 %v2321_v55, %v2319_v4 }
 0x7eb   :  { %v2323_v33 = vpop.eup %2322 }
 0x7ec   :  { %v1751_v40 = vmul.f32 %v2323_v33, %v3338_v8  ;;  %v2325_v10 = vpop.eup %2324 }
 0x7ee   :  { %v1753_v13 = vadd.f32 %v1752_v56, %v1751_v40 }
 0x7f0   :  { %2326 = vtanh.f32 %v1753_v13 }
 0x7fd   :  { %v2327_v30 = vpop.eup %2326 }
 0x7fe   :  { %v1755_v32 = vmul.f32 %v2327_v30, %v2325_v10 }
 0x800   :  { %v1763_v60 = vmul.f32 %v1761_v9, %v1755_v32  ;;  %v1771_v1 = vpack.c.bf16 %v1755_v32, %v1755_v32 }
 0x802   :  { %v1764_v37 = vpack.c.bf16 %v1763_v60, %v1763_v60  ;;  %1805 = vmatmul.mubr.bf16.vlgmr.msra.gmra.mxu0 %v1771_v1  ;;  %1846 = vmatmul.mubr.bf16.vlgmr.msra.gmra.mxu1 %v1771_v1 }
 0x804   :  { %2029 = vst [vmem:[%s3443_s11 + $0x18] sm:$0xf] %v1764_v37 }
 0x8c2   :  { %v1806_v41 = vpop.f32.mrf.mxu0  ;;  %v1847_v34 = vpop.f32.mrf.mxu1 }
 0x8c3   :  { %v1854_v8 = vadd.f32 %v1806_v41, %v3477_v26  ;;  %v1856_v15 = vadd.f32 %v1847_v34, %v3479_v36 }
 0x8c4   :  { %v1808_v31 = vpop.f32.mrf.mxu0  ;;  %v1849_v3 = vpop.f32.mrf.mxu1 }
 0x8c5   :  { %v2030_v28 = vmul.f32 -1.442695, %v1854_v8  ;;  %v1855_v58 = vadd.f32 %v1808_v31, %v3478_v12  ;;  %v2032_v22 = vmul.f32 -1.442695, %v1856_v15  ;;  %v1857_v38 = vadd.f32 %v1849_v3, %v433_v16 }
 0x8c6   :  { %v1810_v59 = vpop.f32.mrf.mxu0  ;;  %v1851_v18 = vpop.f32.mrf.mxu1 }
 0x8c7   :  { %2328 = vpow2.f32 %v2030_v28  ;;  %v2031_v48 = vmul.f32 -1.442695, %v1855_v58 }
 0x8c8   :  { %v1811_v63 = vpop.f32.mrf.mxu0  ;;  %v1852_v39 = vpop.f32.mrf.mxu1 }
 0x8c9   :  { %2330 = vpow2.f32 %v2031_v48 }
 0x8ca   :  { %2332 = vpow2.f32 %v2032_v22 }
 0x8cb   :  { %2334 = vtanh.f32 %v1857_v38 }
 0x8d4   :  { %v2329_v24 = vpop.eup %2328 }
 0x8d5   :  { %v1867_v61 = vadd.f32 1.0, %v2329_v24 }
 0x8d6   :  { %v2331_v43 = vpop.eup %2330 }
 0x8d7   :  { %2336 = vrcp.f32 %v1867_v61  ;;  %v1868_v44 = vadd.f32 1.0, %v2331_v43  ;;  %v2333_v45 = vpop.eup %2332 }
 0x8d8   :  { %v2335_v49 = vpop.eup %2334  ;;  %v1869_v52 = vadd.f32 1.0, %v2333_v45 }
 0x8d9   :  { %2338 = vrcp.f32 %v1868_v44 }
 0x8da   :  { %2340 = vrcp.f32 %v1869_v52 }
 0x8e4   :  { %v2337_v50 = vpop.eup %2336 }
 0x8e5   :  { %v1878_v46 = vmul.f32 %v2337_v50, %v2335_v49 }
 0x8e6   :  { %v2339_v51 = vpop.eup %2338 }
 0x8e7   :  { %v1877_v53 = vmul.f32 %v2339_v51, %v1753_v13  ;;  %v2341_v11 = vpop.eup %2340 }
 0x8e9   :  { %v1879_v54 = vadd.f32 %v1878_v46, %v1877_v53 }
 0x8eb   :  { %1894 = vst [vmem:[%s3444_s13] sm:$0xff] %v1879_v54  ;;  %2342 = vtanh.f32 %v1879_v54 }
 0x8f8   :  { %v2343_v14 = vpop.eup %2342 }
 0x8f9   :  { %v1881_v47 = vmul.f32 %v2343_v14, %v2341_v11 }
 0x8fb   :  { %v1889_v20 = vmul.f32 %v1887_v17, %v1881_v47  ;;  %1893 = vst [vmem:[%s3445_s12] sm:$0xff] %v1881_v47 }
 0x8fd   :  { %v1890_v23 = vpack.c.bf16 %v1889_v20, %v1889_v20 }
 0x8ff   :  { %2034 = vst [vmem:[%s3443_s11 + $0x1c] sm:$0xf] %v1890_v23 }

</bundles_post_ra>
